<compile_context>
chip_gen: v6e
topology: v6e:2x2x1
jax: 0.10.0
libtpu: 0.0.40
codegen_flags: <defaults>
</compile_context>

<pallas_src>
import functools

import jax
import jax.numpy as jnp
from jax.experimental import pallas as pl
from jax.experimental.pallas import tpu as pltpu

N_HEAD = 6
N_EMBD = 64 * N_HEAD          # 384
HIDDEN = 4 * N_EMBD           # 1536
DROPOUT = 0.2                 # identity at inference


def _round_up(x, m):
    return ((x + m - 1) // m) * m


def _ffn_kernel(x_ref, w1_ref, b1_ref, w2_ref, b2_ref, o_ref):
    # x_ref:  (tm, C)  compute dtype (bf16 by default)
    # w1_ref: (C, H)   compute dtype (resident across the grid)
    # b1_ref: (1, H)   f32
    # w2_ref: (H, C)   compute dtype (resident across the grid)
    # b2_ref: (1, C)   f32
    # o_ref:  (tm, C)  output dtype (matches caller's x dtype)
    h = jnp.dot(x_ref[...], w1_ref[...], preferred_element_type=jnp.float32)
    h = jnp.maximum(h + b1_ref[...], 0.0)                 # bias + ReLU in f32
    y = jnp.dot(h.astype(w2_ref.dtype), w2_ref[...],
                preferred_element_type=jnp.float32)
    y = y + b2_ref[...]
    # Dropout is identity in eval mode (p only applied during training).
    o_ref[...] = y.astype(o_ref.dtype)


@functools.partial(jax.jit, static_argnames=("tm", "compute_dtype"))
def feed_forward(x, w1, b1, w2, b2, *, tm=512, compute_dtype=jnp.bfloat16):
    """x: (B, T, n_embd) -> (B, T, n_embd).  Fused Linear+ReLU+Linear kernel."""
    B, T, C = x.shape
    H = w1.shape[1]
    M = B * T

    # Row tile: multiple of 8 (sublane granularity); shrink so the grid has at
    # least 2 programs whenever possible (megacore) but never below 8 rows.
    tm_eff = min(int(tm), max(8, _round_up(pl.cdiv(M, 2), 8)))
    tm_eff = _round_up(tm_eff, 8)
    m_pad = _round_up(M, tm_eff)
    grid = m_pad // tm_eff

    # Cast to compute dtype (bf16 -> MXU-native, halves activation DMA bytes).
    x2d = x.reshape(M, C).astype(compute_dtype)
    if m_pad != M:
        x2d = jnp.pad(x2d, ((0, m_pad - M), (0, 0)))
    w1c = w1.astype(compute_dtype)
    w2c = w2.astype(compute_dtype)
    b1_2d = b1.reshape(1, H).astype(jnp.float32)
    b2_2d = b2.reshape(1, C).astype(jnp.float32)

    # VMEM budget from the real footprint: weights counted double-buffered to
    # be conservative, I/O row tiles double-buffered, plus the f32 (tm, H)
    # hidden intermediate.  Clamp to [32 MiB, 48 MiB] (fits v7x's 64 MiB VMEM).
    c_item = jnp.dtype(compute_dtype).itemsize
    o_item = jnp.dtype(x.dtype).itemsize
    w_bytes = 2 * (C * H + H * C) * c_item
    bias_bytes = 2 * (H + C) * 4
    io_bytes = 2 * tm_eff * C * (2 * c_item + 2 * o_item)
    hidden_bytes = 2 * tm_eff * H * 4
    need = w_bytes + bias_bytes + io_bytes + hidden_bytes
    vmem_limit = int(min(max(need + (16 << 20), 32 << 20), 48 << 20))

    cost = pl.CostEstimate(
        flops=2 * m_pad * (C * H + H * C),
        bytes_accessed=(m_pad * C * (c_item + o_item)
                        + (C * H + H * C) * c_item + (H + C) * 4),
        transcendentals=0,
    )

    out2d = pl.pallas_call(
        _ffn_kernel,
        out_shape=jax.ShapeDtypeStruct((m_pad, C), x.dtype),
        grid_spec=pltpu.PrefetchScalarGridSpec(
            num_scalar_prefetch=0,
            grid=(grid,),
            in_specs=[
                pl.BlockSpec((tm_eff, C), lambda i: (i, 0)),  # x row tile
                pl.BlockSpec((C, H), lambda i: (0, 0)),       # W1 (resident)
                pl.BlockSpec((1, H), lambda i: (0, 0)),       # b1
                pl.BlockSpec((H, C), lambda i: (0, 0)),       # W2 (resident)
                pl.BlockSpec((1, C), lambda i: (0, 0)),       # b2
            ],
            out_specs=pl.BlockSpec((tm_eff, C), lambda i: (i, 0)),
        ),
        compiler_params=pltpu.CompilerParams(
            dimension_semantics=("parallel",),
            vmem_limit_bytes=vmem_limit,
        ),
        cost_estimate=cost,
    )(x2d, w1c, b1_2d, w2c, b2_2d)

    return out2d[:M].reshape(B, T, C)


def _init_params(key, n_embd, hidden, dtype=jnp.float32):
    """Deterministic init mirroring nn.Linear default (uniform +- 1/sqrt(fan_in))."""
    k1, k2, k3, k4 = jax.random.split(key, 4)
    bound1 = 1.0 / jnp.sqrt(jnp.array(n_embd, dtype))
    bound2 = 1.0 / jnp.sqrt(jnp.array(hidden, dtype))
    w1 = jax.random.uniform(k1, (n_embd, hidden), dtype, -bound1, bound1)
    b1 = jax.random.uniform(k2, (hidden,), dtype, -bound1, bound1)
    w2 = jax.random.uniform(k3, (hidden, n_embd), dtype, -bound2, bound2)
    b2 = jax.random.uniform(k4, (n_embd,), dtype, -bound2, bound2)
    return w1, b1, w2, b2


def _reference(x, w1, b1, w2, b2):
    h = jnp.maximum(jnp.einsum("btc,ch->bth", x, w1) + b1, 0.0)
    return jnp.einsum("bth,hc->btc", h, w2) + b2


if __name__ == "__main__":
    key = jax.random.PRNGKey(0)
    kx, kp = jax.random.split(key)
    w1, b1, w2, b2 = _init_params(kp, N_EMBD, HIDDEN)

    # 1) Default path (bf16 compute, f32 accumulation) at small shapes.
    B, T = 2, 8
    x = jax.random.normal(kx, (B, T, N_EMBD), jnp.float32)
    out = feed_forward(x, w1, b1, w2, b2)
    out = jax.block_until_ready(out)
    ref = _reference(x, w1, b1, w2, b2)
    assert out.shape == (B, T, N_EMBD)
    assert jnp.allclose(out, ref, atol=2e-2, rtol=2e-2), "bf16 path mismatch"

    # 2) f32 path with a ragged row count (exercises the zero-padded tail tile).
    B2, T2 = 2, 12                      # M = 24, tile = 16 -> padded to 32
    x2 = jax.random.normal(kx, (B2, T2, N_EMBD), jnp.float32)
    out2 = feed_forward(x2, w1, b1, w2, b2, compute_dtype=jnp.float32)
    out2 = jax.block_until_ready(out2)
    ref2 = _reference(x2, w1, b1, w2, b2)
    assert out2.shape == (B2, T2, N_EMBD)
    assert jnp.allclose(out2, ref2, atol=1e-4, rtol=1e-4), "f32 path mismatch"

    print("KERNEL_OK")
</pallas_src>

<mosaic_0001>
module attributes {stable_mosaic.version = 11 : i64} {
  func.func @_ffn_kernel(%arg0: i32, %arg1: memref<8x384xbf16, #tpu.memory_space<vmem>>, %arg2: memref<384x1536xbf16, #tpu.memory_space<vmem>>, %arg3: memref<1x1536xf32, #tpu.memory_space<vmem>>, %arg4: memref<1536x384xbf16, #tpu.memory_space<vmem>>, %arg5: memref<1x384xf32, #tpu.memory_space<vmem>>, %arg6: memref<8x384xf32, #tpu.memory_space<vmem>>) attributes {dimension_semantics = [#tpu.dimension_semantics<parallel>], iteration_bounds = array<i64: 2>, scalar_prefetch = 0 : i64, scratch_operands = 0 : i64, tpu.core_type = #tpu.core_type<tc>, window_params = [{transform_indices = @transform_0, window_bounds = array<i64: 8, 384>}, {pipeline_mode = #tpu.pipeline_mode<synchronous>, transform_indices = @transform_1, window_bounds = array<i64: 384, 1536>}, {pipeline_mode = #tpu.pipeline_mode<synchronous>, transform_indices = @transform_2, window_bounds = array<i64: 1, 1536>}, {pipeline_mode = #tpu.pipeline_mode<synchronous>, transform_indices = @transform_3, window_bounds = array<i64: 1536, 384>}, {pipeline_mode = #tpu.pipeline_mode<synchronous>, transform_indices = @transform_4, window_bounds = array<i64: 1, 384>}, {transform_indices = @transform_5, window_bounds = array<i64: 8, 384>}]} {
    %c0 = arith.constant 0 : index
    %c0_0 = arith.constant 0 : index
    %0 = vector.load %arg1[%c0, %c0_0] : memref<8x384xbf16, #tpu.memory_space<vmem>>, vector<8x384xbf16>
    %c0_1 = arith.constant 0 : index
    %c0_2 = arith.constant 0 : index
    %1 = vector.load %arg2[%c0_1, %c0_2] : memref<384x1536xbf16, #tpu.memory_space<vmem>>, vector<384x1536xbf16>
    %cst = arith.constant dense<0.000000e+00> : vector<8x1536xf32>
    %2 = tpu.matmul %0, %1, %cst {dimension_numbers = #tpu.dot_dimension_numbers<[1], [0], [0], [1], [0, 0, 1, 1], [], []>} : vector<8x384xbf16>, vector<384x1536xbf16>, vector<8x1536xf32> -> vector<8x1536xf32>
    %c0_3 = arith.constant 0 : index
    %c0_4 = arith.constant 0 : index
    %3 = vector.load %arg3[%c0_3, %c0_4] : memref<1x1536xf32, #tpu.memory_space<vmem>>, vector<1x1536xf32>
    %4 = vector.broadcast %3 : vector<1x1536xf32> to vector<8x1536xf32>
    %5 = arith.addf %2, %4 : vector<8x1536xf32>
    %cst_5 = arith.constant 0.000000e+00 : f32
    %6 = vector.broadcast %cst_5 : f32 to vector<8x1536xf32>
    %7 = arith.maximumf %5, %6 : vector<8x1536xf32>
    %8 = arith.truncf %7 : vector<8x1536xf32> to vector<8x1536xbf16>
    %c0_6 = arith.constant 0 : index
    %c0_7 = arith.constant 0 : index
    %9 = vector.load %arg4[%c0_6, %c0_7] : memref<1536x384xbf16, #tpu.memory_space<vmem>>, vector<1536x384xbf16>
    %cst_8 = arith.constant dense<0.000000e+00> : vector<8x384xf32>
    %10 = tpu.matmul %8, %9, %cst_8 {dimension_numbers = #tpu.dot_dimension_numbers<[1], [0], [0], [1], [0, 0, 1, 1], [], []>} : vector<8x1536xbf16>, vector<1536x384xbf16>, vector<8x384xf32> -> vector<8x384xf32>
    %c0_9 = arith.constant 0 : index
    %c0_10 = arith.constant 0 : index
    %11 = vector.load %arg5[%c0_9, %c0_10] : memref<1x384xf32, #tpu.memory_space<vmem>>, vector<1x384xf32>
    %12 = vector.broadcast %11 : vector<1x384xf32> to vector<8x384xf32>
    %13 = arith.addf %10, %12 : vector<8x384xf32>
    %c0_11 = arith.constant 0 : index
    %c0_12 = arith.constant 0 : index
    %14 = vector.load %arg6[%c0_11, %c0_12] : memref<8x384xf32, #tpu.memory_space<vmem>>, vector<8x384xf32>
    tpu.vector_store %arg6[%c0_11, %c0_12], %13 {strides = array<i32>} : memref<8x384xf32, #tpu.memory_space<vmem>>, vector<8x384xf32>,
    return
  }
  func.func @transform_0(%arg0: i32) -> (i32, i32) {
    %c0_i32 = arith.constant 0 : i32
    %c0_i32_0 = arith.constant 0 : i32
    return %arg0, %c0_i32 : i32, i32
  }
  func.func @transform_1(%arg0: i32) -> (i32, i32) {
    %c0_i32 = arith.constant 0 : i32
    %c0_i32_0 = arith.constant 0 : i32
    %c0_i32_1 = arith.constant 0 : i32
    return %c0_i32, %c0_i32_0 : i32, i32
  }
  func.func @transform_2(%arg0: i32) -> (i32, i32) {
    %c0_i32 = arith.constant 0 : i32
    %c0_i32_0 = arith.constant 0 : i32
    %c0_i32_1 = arith.constant 0 : i32
    return %c0_i32, %c0_i32_0 : i32, i32
  }
  func.func @transform_3(%arg0: i32) -> (i32, i32) {
    %c0_i32 = arith.constant 0 : i32
    %c0_i32_0 = arith.constant 0 : i32
    %c0_i32_1 = arith.constant 0 : i32
    return %c0_i32, %c0_i32_0 : i32, i32
  }
  func.func @transform_4(%arg0: i32) -> (i32, i32) {
    %c0_i32 = arith.constant 0 : i32
    %c0_i32_0 = arith.constant 0 : i32
    %c0_i32_1 = arith.constant 0 : i32
    return %c0_i32, %c0_i32_0 : i32, i32
  }
  func.func @transform_5(%arg0: i32) -> (i32, i32) {
    %c0_i32 = arith.constant 0 : i32
    %c0_i32_0 = arith.constant 0 : i32
    return %arg0, %c0_i32 : i32, i32
  }
}

</mosaic_0001>

<bundles_post_ra>
// kernel: feed_forward.1
= control target key start
LH: loop header
LB: loop body
LE: loop exit
PB: predicated region body
PF: predicated region fallthrough
CT: control target
= control target key end

     0   :  { %10 = vsyncpa [#allocation3], 0  ;;  %s8736_s0 = inlined_call_operand.vmem [shape: bf16[16,384], index: 0, kind: input, shape index: {}]   ;;  %s8737_s1 = inlined_call_operand.vmem [shape: bf16[384,1536], index: 1, kind: input, shape index: {}]   ;;  %s8738_s2 = inlined_call_operand.vmem [shape: f32[1,1536], index: 2, kind: input, shape index: {}]   ;;  %s8739_s3 = inlined_call_operand.vmem [shape: bf16[1536,384], index: 3, kind: input, shape index: {}]   ;;  %s8740_s4 = inlined_call_operand.vmem [shape: f32[1,384], index: 4, kind: input, shape index: {}]   ;;  %s8741_s5 = inlined_call_operand.hbm [shape: f32[16,384], index: 5, kind: output, shape index: {}]  }
   0x1   :  { %12 = vsyncpa [#allocation3 + $0x1], 0  ;;  %s6722_s18 = smov 0   ;;  %s6724_s19 = smov 0  }
   0x2   :  { %s6726_s20 = smov 0   ;;  %s6728_s21 = smov 0  }
   0x3 LB: > { %s6743_s22 = sadd.s32 4294967295, %s6688_s21   ;;  %s5045_s23 = sadd.s32 4294967294, %s6688_s21   ;;  %s6688_s21 = sphi %s6728_s21, %s8747_s21   ;;  %s6684_s20 = sphi %s6726_s20, %s8746_s20   ;;  %s6680_s19 = sphi %s6724_s19, %s8745_s19   ;;  %s6676_s18 = sphi %s6722_s18, %s8744_s18  }
   0x4   : > { %s6747_s24 = sadd.s32 1, %s6688_s21   ;;  %s135_s25 = sadd.s32 1, %s6684_s20 }
   0x5   : > { %s132_s26 = ssub.s32 %s6688_s21, %s6747_s24  ;;  %p145_p0 = scmp.ne.s32.totalorder %s6684_s20, %s6680_s19 }
   0x6   : > { %p133_p1 = scmp.eq.s32.totalorder %s132_s26, 0  ;;  %p146_p2 = scmp.eq.s32.totalorder %s6743_s22, 1 }
   0x7   : > { %p151_p3 = scmp.ne.s32.totalorder %s6680_s19, %s6676_s18  ;;  %p152_p4 = scmp.eq.s32.totalorder %s5045_s23, 1 }
   0x8   : > { %s6758_s27 = scalar_select %p133_p1, %s6684_s20, %s135_s25  }
   0x9   : > { %p6760_p5 = por %p146_p2, %p145_p0  ;;  %p6764_p6 = por %p152_p4, %p151_p3 }
   0xa   : > { %p5048_p7 = scmp.ge.s32.totalorder %s6688_s21, 1  ;;  %p190_p8 = scmp.lt.s32.totalorder %s6688_s21, 3 }
   0xc   : > { %p191_p9 = pnand %p5048_p7, %p190_p8 }
   0xd   : > { %p218_p10 = scmp.lt.s32.totalorder (!%p191_p9), %s6743_s22, 1  ;;  %s215_s8 = sand.u32 (!%p191_p9), 1, %s6680_s19  }
   0xe   : > { %194 = sbr.rel (%p191_p9) target bundleno = 821 (0x335), region = 40  ;;  %s4972_s17 = scalar_lea.sflag (!%p191_p9), [#allocation3], %s215_s8 }
   0xf   : > { %s5764_s10 = smul.u32 (!%p191_p9), 24, %s215_s8 }
  0x11   : > { %s8687_s11 = scalar_lea.vmem (!%p191_p9), [#allocation2], %s5764_s10 }
  0x12   : > { %s4986_s12 = sshll.u32 (!%p191_p9), %s8687_s11, 4  ;;  %s4987_s12 = int_to_ptr.vmem [resolvable:$true] %s4986_s12 }
  0x13   : > { %v5807_v0 = vld [vmem:[%s8737_s1 + $0x2a4] ss:$48 sps:$4 sm:$0xff]   ;;  %v6690_v2 = vmov 0   ;;  %v5811_v3 = vld [vmem:[%s8737_s1 + $0x2a0] ss:$48 sps:$4 sm:$0xff]   ;;  %s219_s9 = scalar_select %p218_p10, %s6743_s22, 1 }
  0x14   : > { %v5809_v1 = vld [vmem:[%s8737_s1 + $0x8a4] ss:$48 sps:$4 sm:$0xff]   ;;  %2102 = vmatprep.mubr.bf16.mxu1 %v6690_v2  ;;  %2029 = vmatprep.subr.bf16.mxu0 %v5807_v0  ;;  %v5812_v4 = vld [vmem:[%s8737_s1 + $0x8a0] ss:$48 sps:$4 sm:$0xff]   ;;  %v5860_v34 = vld [vmem:[%s8737_s1 + $0x2ac] ss:$48 sps:$4 sm:$0xff]  }
  0x15   : > { %2070 = vmatprep.subr.bf16.mxu1 %v5809_v1  ;;  %v5813_v5 = vld [vmem:[%s8737_s1 + $0x244] ss:$48 sps:$4 sm:$0xff]   ;;  %2030 = vmatpush1.bf16.msra.mxu0 %v5811_v3  ;;  %v5817_v7 = vld [vmem:[%s8737_s1 + $0x240] ss:$48 sps:$4 sm:$0xff]   ;;  %s5765_s23 = smul.u32 12, %s219_s9  ;;  %s6628_s25 = scalar_lea.vmem %s4987_s12, 384 }
  0x16   : > { %2071 = vmatpush1.bf16.msra.mxu1 %v5812_v4  ;;  %v5815_v6 = vld [vmem:[%s8737_s1 + $0x844] ss:$48 sps:$4 sm:$0xff]   ;;  %2031 = vmatprep.subr.bf16.mxu0 %v5813_v5  ;;  %v5818_v8 = vld [vmem:[%s8737_s1 + $0x840] ss:$48 sps:$4 sm:$0xff]   ;;  %v5858_v36 = vld [vmem:[%s8737_s1 + $0x2a8] ss:$48 sps:$4 sm:$0xff]   ;;  %p6629_p11 = scmp.ne.s32.totalorder %s4987_s12, %s6628_s25 }
  0x17   : > { %2072 = vmatprep.subr.bf16.mxu1 %v5815_v6  ;;  %v5819_v9 = vld [vmem:[%s8737_s1 + $0x1e4] ss:$48 sps:$4 sm:$0xff]   ;;  %v5823_v11 = vld [vmem:[%s8737_s1 + $0x1e0] ss:$48 sps:$4 sm:$0xff]   ;;  %s6854_s13 = scalar_lea.vmem %s8736_s0, %s5765_s23  ;;  %v5866_v39 = vld [vmem:[%s8737_s1 + $0x24c] ss:$48 sps:$4 sm:$0xff]  }
  0x18   : > { %v5821_v10 = vld [vmem:[%s8737_s1 + $0x7e4] ss:$48 sps:$4 sm:$0xff]   ;;  %v5824_v12 = vld [vmem:[%s8737_s1 + $0x7e0] ss:$48 sps:$4 sm:$0xff]   ;;  %v6881_v35 = vld [vmem:[%s6854_s13 + $0x8] ss:$0 sps:$4 sm:$0xff]   ;;  %p6630_p12 = pnand %p6629_p11, %p6760_p5 }
  0x19   : > { %2032 = vmatpush1.bf16.msra.mxu0 %v5817_v7  ;;  %v5825_v13 = vld [vmem:[%s8737_s1 + $0x184] ss:$48 sps:$4 sm:$0xff]   ;;  %v5829_v15 = vld [vmem:[%s8737_s1 + $0x180] ss:$48 sps:$4 sm:$0xff]   ;;  %v5864_v40 = vld [vmem:[%s8737_s1 + $0x248] ss:$48 sps:$4 sm:$0xff]  }
  0x1a   : > { %2073 = vmatpush1.bf16.msra.mxu1 %v5818_v8  ;;  %2033 = vmatprep.subr.bf16.mxu0 %v5819_v9  ;;  %v5827_v14 = vld [vmem:[%s8737_s1 + $0x784] ss:$48 sps:$4 sm:$0xff]   ;;  %v5830_v16 = vld [vmem:[%s8737_s1 + $0x780] ss:$48 sps:$4 sm:$0xff]   ;;  %v5872_v43 = vld [vmem:[%s8737_s1 + $0x1ec] ss:$48 sps:$4 sm:$0xff]   ;;  %p6631_p13 = pneg %p6630_p12 }
  0x1b   : > { %2074 = vmatprep.subr.bf16.mxu1 %v5821_v10  ;;  %v5831_v17 = vld [vmem:[%s8737_s1 + $0x124] ss:$48 sps:$4 sm:$0xff]   ;;  %v5835_v19 = vld [vmem:[%s8737_s1 + $0x120] ss:$48 sps:$4 sm:$0xff]   ;;  %v5870_v44 = vld [vmem:[%s8737_s1 + $0x1e8] ss:$48 sps:$4 sm:$0xff]  }
  0x1c   : > { %v5833_v18 = vld [vmem:[%s8737_s1 + $0x724] ss:$48 sps:$4 sm:$0xff]   ;;  %v5836_v20 = vld [vmem:[%s8737_s1 + $0x720] ss:$48 sps:$4 sm:$0xff]   ;;  %v5878_v47 = vld [vmem:[%s8737_s1 + $0x18c] ss:$48 sps:$4 sm:$0xff]  }
  0x1d   : > { %2034 = vmatpush1.bf16.msra.mxu0 %v5823_v11  ;;  %v5837_v21 = vld [vmem:[%s8737_s1 + $0xc4] ss:$48 sps:$4 sm:$0xff]   ;;  %v5841_v23 = vld [vmem:[%s8737_s1 + $0xc0] ss:$48 sps:$4 sm:$0xff]   ;;  %v5876_v48 = vld [vmem:[%s8737_s1 + $0x188] ss:$48 sps:$4 sm:$0xff]  }
  0x1e   : > { %2075 = vmatpush1.bf16.msra.mxu1 %v5824_v12  ;;  %2035 = vmatprep.subr.bf16.mxu0 %v5825_v13  ;;  %v5839_v22 = vld [vmem:[%s8737_s1 + $0x6c4] ss:$48 sps:$4 sm:$0xff]   ;;  %v5842_v24 = vld [vmem:[%s8737_s1 + $0x6c0] ss:$48 sps:$4 sm:$0xff]   ;;  %v5884_v53 = vld [vmem:[%s8737_s1 + $0x12c] ss:$48 sps:$4 sm:$0xff]  }
  0x1f   : > { %2076 = vmatprep.subr.bf16.mxu1 %v5827_v14  ;;  %v5843_v25 = vld [vmem:[%s8737_s1 + $0x64] ss:$48 sps:$4 sm:$0xff]   ;;  %v5847_v27 = vld [vmem:[%s8737_s1 + $0x60] ss:$48 sps:$4 sm:$0xff]   ;;  %v5882_v54 = vld [vmem:[%s8737_s1 + $0x128] ss:$48 sps:$4 sm:$0xff]  }
  0x20   : > { %v5845_v26 = vld [vmem:[%s8737_s1 + $0x664] ss:$48 sps:$4 sm:$0xff]   ;;  %v5848_v28 = vld [vmem:[%s8737_s1 + $0x660] ss:$48 sps:$4 sm:$0xff]   ;;  %v5890_v57 = vld [vmem:[%s8737_s1 + $0xcc] ss:$48 sps:$4 sm:$0xff]  }
  0x21   : > { %2036 = vmatpush1.bf16.msra.mxu0 %v5829_v15  ;;  %v5849_v29 = vld [vmem:[%s8737_s1 + $0x4] ss:$48 sps:$4 sm:$0xff]   ;;  %v5853_v31 = vld [vmem:[%s8737_s1] ss:$48 sps:$4 sm:$0xff]   ;;  %v5888_v58 = vld [vmem:[%s8737_s1 + $0xc8] ss:$48 sps:$4 sm:$0xff]  }
  0x22   : > { %2077 = vmatpush1.bf16.msra.mxu1 %v5830_v16  ;;  %2037 = vmatprep.subr.bf16.mxu0 %v5831_v17  ;;  %v5851_v30 = vld [vmem:[%s8737_s1 + $0x604] ss:$48 sps:$4 sm:$0xff]   ;;  %v5854_v32 = vld [vmem:[%s8737_s1 + $0x600] ss:$48 sps:$4 sm:$0xff]   ;;  %v5896_v61 = vld [vmem:[%s8737_s1 + $0x6c] ss:$48 sps:$4 sm:$0xff]  }
  0x23   : > { %2078 = vmatprep.subr.bf16.mxu1 %v5833_v18  ;;  %v5855_v33 = vld [vmem:[%s8737_s1 + $0x5a4] ss:$48 sps:$4 sm:$0xff]   ;;  %v5861_v37 = vld [vmem:[%s8737_s1 + $0x5a0] ss:$48 sps:$4 sm:$0xff]   ;;  %v5894_v62 = vld [vmem:[%s8737_s1 + $0x68] ss:$48 sps:$4 sm:$0xff]  }
  0x24   : > { %v5862_v38 = vld [vmem:[%s8737_s1 + $0x544] ss:$48 sps:$4 sm:$0xff]   ;;  %v5867_v41 = vld [vmem:[%s8737_s1 + $0x540] ss:$48 sps:$4 sm:$0xff]   ;;  %v5902_v1 = vld [vmem:[%s8737_s1 + $0xc] ss:$48 sps:$4 sm:$0xff]  }
  0x25   : > { %2038 = vmatpush1.bf16.msra.mxu0 %v5835_v19  ;;  %v5868_v42 = vld [vmem:[%s8737_s1 + $0x4e4] ss:$48 sps:$4 sm:$0xff]   ;;  %v5873_v45 = vld [vmem:[%s8737_s1 + $0x4e0] ss:$48 sps:$4 sm:$0xff]   ;;  %v5900_v3 = vld [vmem:[%s8737_s1 + $0x8] ss:$48 sps:$4 sm:$0xff]  }
  0x26   : > { %2079 = vmatpush1.bf16.msra.mxu1 %v5836_v20  ;;  %2039 = vmatprep.subr.bf16.mxu0 %v5837_v21  ;;  %v5874_v46 = vld [vmem:[%s8737_s1 + $0x484] ss:$48 sps:$4 sm:$0xff]   ;;  %v5879_v50 = vld [vmem:[%s8737_s1 + $0x480] ss:$48 sps:$4 sm:$0xff]   ;;  %v5908_v5 = vld [vmem:[%s8737_s1 + $0x5ac] ss:$48 sps:$4 sm:$0xff]  }
  0x27   : > { %2080 = vmatprep.subr.bf16.mxu1 %v5839_v22  ;;  %v224_v49 = vld [vmem:[%s6854_s13] sm:$0xff]  ;;  %v5911_v6 = vld [vmem:[%s8737_s1 + $0x8ac] ss:$48 sps:$4 sm:$0xff]   ;;  %v5906_v8 = vld [vmem:[%s8737_s1 + $0x5a8] ss:$48 sps:$4 sm:$0xff]   ;;  %s5766_s9 = smul.u32 384, %s6743_s22 }
  0x28   : > { %v5880_v51 = vld [vmem:[%s8737_s1 + $0x424] ss:$48 sps:$4 sm:$0xff]   ;;  %v6930_v52 = vcombine.high %v224_v49, %v224_v49  ;;  %v5885_v55 = vld [vmem:[%s8737_s1 + $0x420] ss:$48 sps:$4 sm:$0xff]   ;;  %v6985_v7 = vcombine.low %v224_v49, %v224_v49  ;;  %v5909_v9 = vld [vmem:[%s8737_s1 + $0x8a8] ss:$48 sps:$4 sm:$0xff]  }
  0x29   : > { %2040 = vmatpush1.bf16.msra.mxu0 %v5841_v23  ;;  %v5886_v56 = vld [vmem:[%s8737_s1 + $0x3c4] ss:$48 sps:$4 sm:$0xff]   ;;  %v5891_v59 = vld [vmem:[%s8737_s1 + $0x3c0] ss:$48 sps:$4 sm:$0xff]   ;;  %v5914_v10 = vld [vmem:[%s8737_s1 + $0x54c] ss:$48 sps:$4 sm:$0xff]   ;;  %s8698_s16 = scalar_lea.hbm %s8741_s5, %s5766_s9 }
  0x2a   : > { %2081 = vmatpush1.bf16.msra.mxu1 %v5842_v24  ;;  %2041 = vmatprep.subr.bf16.mxu0 %v5843_v25  ;;  %v5892_v60 = vld [vmem:[%s8737_s1 + $0x364] ss:$48 sps:$4 sm:$0xff]   ;;  %v5897_v63 = vld [vmem:[%s8737_s1 + $0x360] ss:$48 sps:$4 sm:$0xff]   ;;  %v5917_v11 = vld [vmem:[%s8737_s1 + $0x84c] ss:$48 sps:$4 sm:$0xff]  }
  0x2b   : > { %2082 = vmatprep.subr.bf16.mxu1 %v5845_v26  ;;  %2061 = vmatprep.mubr.bf16.mxu0 %v6930_v52  ;;  %v5898_v0 = vld [vmem:[%s8737_s1 + $0x304] ss:$48 sps:$4 sm:$0xff]   ;;  %v5903_v4 = vld [vmem:[%s8737_s1 + $0x300] ss:$48 sps:$4 sm:$0xff]   ;;  %v5912_v12 = vld [vmem:[%s8737_s1 + $0x548] ss:$48 sps:$4 sm:$0xff]  }
  0x2c   : > { %v5915_v13 = vld [vmem:[%s8737_s1 + $0x848] ss:$48 sps:$4 sm:$0xff]   ;;  %v5920_v14 = vld [vmem:[%s8737_s1 + $0x4ec] ss:$48 sps:$4 sm:$0xff]   ;;  %v5966_v49 = vld [vmem:[%s8737_s1 + $0x1f0] ss:$48 sps:$4 sm:$0xff]  }
  0x2d   : > { %2042 = vmatpush1.bf16.msra.mxu0 %v5847_v27  ;;  %v5923_v15 = vld [vmem:[%s8737_s1 + $0x7ec] ss:$48 sps:$4 sm:$0xff]   ;;  %v5918_v16 = vld [vmem:[%s8737_s1 + $0x4e8] ss:$48 sps:$4 sm:$0xff]   ;;  %s6691_s22 = smov [#allocation2]  }
  0x2e   : > { %2083 = vmatpush1.bf16.msra.mxu1 %v5848_v28  ;;  %2043 = vmatprep.subr.bf16.mxu0 %v5849_v29  ;;  %v5921_v17 = vld [vmem:[%s8737_s1 + $0x7e8] ss:$48 sps:$4 sm:$0xff]   ;;  %v5926_v18 = vld [vmem:[%s8737_s1 + $0x48c] ss:$48 sps:$4 sm:$0xff]  }
  0x2f   : > { %2084 = vmatprep.subr.bf16.mxu1 %v5851_v30  ;;  %v5929_v19 = vld [vmem:[%s8737_s1 + $0x78c] ss:$48 sps:$4 sm:$0xff]   ;;  %v5924_v20 = vld [vmem:[%s8737_s1 + $0x488] ss:$48 sps:$4 sm:$0xff]  }
  0x30   : > { %v5927_v21 = vld [vmem:[%s8737_s1 + $0x788] ss:$48 sps:$4 sm:$0xff]   ;;  %v5932_v22 = vld [vmem:[%s8737_s1 + $0x42c] ss:$48 sps:$4 sm:$0xff]  }
  0x31   : > { %2044 = vmatpush1.bf16.msra.mxu0 %v5853_v31  ;;  %v5935_v23 = vld [vmem:[%s8737_s1 + $0x72c] ss:$48 sps:$4 sm:$0xff]   ;;  %v5930_v24 = vld [vmem:[%s8737_s1 + $0x428] ss:$48 sps:$4 sm:$0xff]  }
  0x32   : > { %2085 = vmatpush1.bf16.msra.mxu1 %v5854_v32  ;;  %2045 = vmatprep.subr.bf16.mxu0 %v5855_v33  ;;  %v5933_v25 = vld [vmem:[%s8737_s1 + $0x728] ss:$48 sps:$4 sm:$0xff]   ;;  %v5938_v26 = vld [vmem:[%s8737_s1 + $0x3cc] ss:$48 sps:$4 sm:$0xff]  }
  0x33   : > { %2111 = vmatprep.subr.bf16.mxu1 %v5860_v34  ;;  %v5941_v27 = vld [vmem:[%s8737_s1 + $0x6cc] ss:$48 sps:$4 sm:$0xff]   ;;  %v5936_v28 = vld [vmem:[%s8737_s1 + $0x3c8] ss:$48 sps:$4 sm:$0xff]  }
  0x34   : > { %v5939_v29 = vld [vmem:[%s8737_s1 + $0x6c8] ss:$48 sps:$4 sm:$0xff]   ;;  %v5944_v30 = vld [vmem:[%s8737_s1 + $0x36c] ss:$48 sps:$4 sm:$0xff]  }
  0x35   : > { %2103 = vmatmul.mubr.bf16.vlgmr.msra.gmra.mxu1 %v6881_v35  ;;  %2046 = vmatpush2.bf16.msra.mxu0 %v5861_v37  ;;  %v5947_v31 = vld [vmem:[%s8737_s1 + $0x66c] ss:$48 sps:$4 sm:$0xff]   ;;  %v5942_v32 = vld [vmem:[%s8737_s1 + $0x368] ss:$48 sps:$4 sm:$0xff]  }
  0x36   : > { %2112 = vmatpush1.bf16.msra.mxu1 %v5858_v36  ;;  %2047 = vmatprep.subr.bf16.mxu0 %v5862_v38  ;;  %v5945_v33 = vld [vmem:[%s8737_s1 + $0x668] ss:$48 sps:$4 sm:$0xff]   ;;  %v5950_v34 = vld [vmem:[%s8737_s1 + $0x30c] ss:$48 sps:$4 sm:$0xff]  }
  0x37   : > { %2113 = vmatprep.subr.bf16.mxu1 %v5866_v39  ;;  %2143 = vmatprep.mubr.bf16.mxu1 %v6930_v52  ;;  %v5953_v36 = vld [vmem:[%s8737_s1 + $0x60c] ss:$48 sps:$4 sm:$0xff]   ;;  %v5948_v37 = vld [vmem:[%s8737_s1 + $0x308] ss:$48 sps:$4 sm:$0xff]   ;;  %v5956_v39 = vld [vmem:[%s8737_s1 + $0x2b4] ss:$48 sps:$4 sm:$0xff]  }
  0x38   : > { %v5951_v38 = vld [vmem:[%s8737_s1 + $0x608] ss:$48 sps:$4 sm:$0xff]  }
  0x39   : > { %2048 = vmatpush2.bf16.msra.mxu0 %v5867_v41  ;;  %v5954_v41 = vld [vmem:[%s8737_s1 + $0x2b0] ss:$48 sps:$4 sm:$0xff]  }
  0x3a   : > { %2114 = vmatpush1.bf16.msra.mxu1 %v5864_v40  ;;  %2049 = vmatprep.subr.bf16.mxu0 %v5868_v42  ;;  %v5959_v40 = vld [vmem:[%s8737_s1 + $0x8b4] ss:$48 sps:$4 sm:$0xff]   ;;  %v5957_v42 = vld [vmem:[%s8737_s1 + $0x8b0] ss:$48 sps:$4 sm:$0xff]  }
  0x3b   : > { %2115 = vmatprep.subr.bf16.mxu1 %v5872_v43  ;;  %v5962_v43 = vld [vmem:[%s8737_s1 + $0x254] ss:$48 sps:$4 sm:$0xff]  }
  0x3d   : > { %2050 = vmatpush2.bf16.msra.mxu0 %v5873_v45  ;;  %v5960_v45 = vld [vmem:[%s8737_s1 + $0x250] ss:$48 sps:$4 sm:$0xff]  }
  0x3e   : > { %2116 = vmatpush1.bf16.msra.mxu1 %v5870_v44  ;;  %2051 = vmatprep.subr.bf16.mxu0 %v5874_v46  ;;  %v5965_v44 = vld [vmem:[%s8737_s1 + $0x854] ss:$48 sps:$4 sm:$0xff]   ;;  %v5963_v46 = vld [vmem:[%s8737_s1 + $0x850] ss:$48 sps:$4 sm:$0xff]  }
  0x3f   : > { %2117 = vmatprep.subr.bf16.mxu1 %v5878_v47  ;;  %v5968_v47 = vld [vmem:[%s8737_s1 + $0x1f4] ss:$48 sps:$4 sm:$0xff]  }
  0x41   : > { %2052 = vmatpush2.bf16.msra.mxu0 %v5879_v50  ;;  %v5969_v50 = vld [vmem:[%s8737_s1 + $0x7f0] ss:$48 sps:$4 sm:$0xff]  }
  0x42   : > { %2118 = vmatpush1.bf16.msra.mxu1 %v5876_v48  ;;  %2053 = vmatprep.subr.bf16.mxu0 %v5880_v51  ;;  %v5971_v48 = vld [vmem:[%s8737_s1 + $0x7f4] ss:$48 sps:$4 sm:$0xff]  }
  0x43   : > { %2119 = vmatprep.subr.bf16.mxu1 %v5884_v53  ;;  %v5974_v51 = vld [vmem:[%s8737_s1 + $0x194] ss:$48 sps:$4 sm:$0xff]  }
  0x44   : > { %v5977_v53 = vld [vmem:[%s8737_s1 + $0x794] ss:$48 sps:$4 sm:$0xff]  }
  0x45   : > { %2054 = vmatpush2.bf16.msra.mxu0 %v5885_v55  ;;  %v5975_v55 = vld [vmem:[%s8737_s1 + $0x790] ss:$48 sps:$4 sm:$0xff]  }
  0x46   : > { %2120 = vmatpush1.bf16.msra.mxu1 %v5882_v54  ;;  %2055 = vmatprep.subr.bf16.mxu0 %v5886_v56  ;;  %v5972_v54 = vld [vmem:[%s8737_s1 + $0x190] ss:$48 sps:$4 sm:$0xff]   ;;  %v5980_v56 = vld [vmem:[%s8737_s1 + $0x134] ss:$48 sps:$4 sm:$0xff]  }
  0x47   : > { %2121 = vmatprep.subr.bf16.mxu1 %v5890_v57  ;;  %v5983_v57 = vld [vmem:[%s8737_s1 + $0x734] ss:$48 sps:$4 sm:$0xff]  }
  0x49   : > { %2056 = vmatpush2.bf16.msra.mxu0 %v5891_v59  ;;  %v5981_v59 = vld [vmem:[%s8737_s1 + $0x730] ss:$48 sps:$4 sm:$0xff]  }
  0x4a   : > { %2122 = vmatpush1.bf16.msra.mxu1 %v5888_v58  ;;  %2057 = vmatprep.subr.bf16.mxu0 %v5892_v60  ;;  %v5978_v58 = vld [vmem:[%s8737_s1 + $0x130] ss:$48 sps:$4 sm:$0xff]   ;;  %v5986_v60 = vld [vmem:[%s8737_s1 + $0xd4] ss:$48 sps:$4 sm:$0xff]  }
  0x4b   : > { %2123 = vmatprep.subr.bf16.mxu1 %v5896_v61  ;;  %v5989_v61 = vld [vmem:[%s8737_s1 + $0x6d4] ss:$48 sps:$4 sm:$0xff]  }
  0x4d   : > { %2058 = vmatpush2.bf16.msra.mxu0 %v5897_v63  ;;  %v5987_v63 = vld [vmem:[%s8737_s1 + $0x6d0] ss:$48 sps:$4 sm:$0xff]  }
  0x4e   : > { %2124 = vmatpush1.bf16.msra.mxu1 %v5894_v62  ;;  %2059 = vmatprep.subr.bf16.mxu0 %v5898_v0  ;;  %v5984_v62 = vld [vmem:[%s8737_s1 + $0xd0] ss:$48 sps:$4 sm:$0xff]   ;;  %v5992_v0 = vld [vmem:[%s8737_s1 + $0x74] ss:$48 sps:$4 sm:$0xff]  }
  0x4f   : > { %2125 = vmatprep.subr.bf16.mxu1 %v5902_v1  ;;  %v5995_v1 = vld [vmem:[%s8737_s1 + $0x674] ss:$48 sps:$4 sm:$0xff]  }
  0x51   : > { %2060 = vmatpush2.bf16.msra.mxu0 %v5903_v4  ;;  %v5993_v4 = vld [vmem:[%s8737_s1 + $0x670] ss:$48 sps:$4 sm:$0xff]  }
  0x52   : > { %2126 = vmatpush1.bf16.msra.mxu1 %v5900_v3  ;;  %2152 = vmatprep.subr.bf16.mxu0 %v5911_v6  ;;  %v5990_v3 = vld [vmem:[%s8737_s1 + $0x70] ss:$48 sps:$4 sm:$0xff]   ;;  %v6001_v6 = vld [vmem:[%s8737_s1 + $0x614] ss:$48 sps:$4 sm:$0xff]  }
  0x53   : > { %2127 = vmatprep.subr.bf16.mxu1 %v5908_v5  ;;  %v5998_v5 = vld [vmem:[%s8737_s1 + $0x14] ss:$48 sps:$4 sm:$0xff]  }
  0x54   : > { %2062 = vmatmul.mubr.bf16.vlgmr.msra.gmra.mxu0 %v6985_v7 }
  0x55   : > { %2153 = vmatpush1.bf16.msra.mxu0 %v5909_v9  ;;  %2184 = vmatprep.mubr.bf16.mxu0 %v6690_v2  ;;  %v5999_v9 = vld [vmem:[%s8737_s1 + $0x610] ss:$48 sps:$4 sm:$0xff]  }
  0x56   : > { %2128 = vmatpush2.bf16.msra.mxu1 %v5906_v8  ;;  %2154 = vmatprep.subr.bf16.mxu0 %v5917_v11  ;;  %v5996_v8 = vld [vmem:[%s8737_s1 + $0x10] ss:$48 sps:$4 sm:$0xff]   ;;  %v6007_v11 = vld [vmem:[%s8737_s1 + $0x2bc] ss:$48 sps:$4 sm:$0xff]  }
  0x57   : > { %2129 = vmatprep.subr.bf16.mxu1 %v5914_v10  ;;  %v6004_v10 = vld [vmem:[%s8737_s1 + $0x5b4] ss:$48 sps:$4 sm:$0xff]  }
  0x59   : > { %2155 = vmatpush1.bf16.msra.mxu0 %v5915_v13  ;;  %v6005_v13 = vld [vmem:[%s8737_s1 + $0x2b8] ss:$48 sps:$4 sm:$0xff]  }
  0x5a   : > { %2130 = vmatpush2.bf16.msra.mxu1 %v5912_v12  ;;  %2156 = vmatprep.subr.bf16.mxu0 %v5923_v15  ;;  %v6002_v12 = vld [vmem:[%s8737_s1 + $0x5b0] ss:$48 sps:$4 sm:$0xff]   ;;  %v6013_v15 = vld [vmem:[%s8737_s1 + $0x25c] ss:$48 sps:$4 sm:$0xff]  }
  0x5b   : > { %2131 = vmatprep.subr.bf16.mxu1 %v5920_v14  ;;  %v6010_v14 = vld [vmem:[%s8737_s1 + $0x554] ss:$48 sps:$4 sm:$0xff]  }
  0x5d   : > { %2157 = vmatpush1.bf16.msra.mxu0 %v5921_v17  ;;  %v6011_v17 = vld [vmem:[%s8737_s1 + $0x258] ss:$48 sps:$4 sm:$0xff]  }
  0x5e   : > { %2132 = vmatpush2.bf16.msra.mxu1 %v5918_v16  ;;  %2158 = vmatprep.subr.bf16.mxu0 %v5929_v19  ;;  %v6008_v16 = vld [vmem:[%s8737_s1 + $0x550] ss:$48 sps:$4 sm:$0xff]  }
  0x5f   : > { %2133 = vmatprep.subr.bf16.mxu1 %v5926_v18  ;;  %v6016_v18 = vld [vmem:[%s8737_s1 + $0x4f4] ss:$48 sps:$4 sm:$0xff]   ;;  %v6014_v19 = vld [vmem:[%s8737_s1 + $0x4f0] ss:$48 sps:$4 sm:$0xff]  }
  0x61   : > { %2159 = vmatpush1.bf16.msra.mxu0 %v5927_v21  ;;  %v6022_v21 = vld [vmem:[%s8737_s1 + $0x494] ss:$48 sps:$4 sm:$0xff]  }
  0x62   : > { %2134 = vmatpush2.bf16.msra.mxu1 %v5924_v20  ;;  %2160 = vmatprep.subr.bf16.mxu0 %v5935_v23  ;;  %v6017_v20 = vld [vmem:[%s8737_s1 + $0x1f8] ss:$48 sps:$4 sm:$0xff]   ;;  %v6020_v23 = vld [vmem:[%s8737_s1 + $0x490] ss:$48 sps:$4 sm:$0xff]  }
  0x63   : > { %2135 = vmatprep.subr.bf16.mxu1 %v5932_v22  ;;  %v6025_v22 = vld [vmem:[%s8737_s1 + $0x19c] ss:$48 sps:$4 sm:$0xff]  }
  0x65   : > { %2161 = vmatpush1.bf16.msra.mxu0 %v5933_v25  ;;  %v6028_v25 = vld [vmem:[%s8737_s1 + $0x434] ss:$48 sps:$4 sm:$0xff]  }
  0x66   : > { %2136 = vmatpush2.bf16.msra.mxu1 %v5930_v24  ;;  %2162 = vmatprep.subr.bf16.mxu0 %v5941_v27  ;;  %v6023_v24 = vld [vmem:[%s8737_s1 + $0x198] ss:$48 sps:$4 sm:$0xff]   ;;  %v6026_v27 = vld [vmem:[%s8737_s1 + $0x430] ss:$48 sps:$4 sm:$0xff]  }
  0x67   : > { %2137 = vmatprep.subr.bf16.mxu1 %v5938_v26  ;;  %v6031_v26 = vld [vmem:[%s8737_s1 + $0x13c] ss:$48 sps:$4 sm:$0xff]  }
  0x69   : > { %2163 = vmatpush1.bf16.msra.mxu0 %v5939_v29  ;;  %v6034_v29 = vld [vmem:[%s8737_s1 + $0x3d4] ss:$48 sps:$4 sm:$0xff]  }
  0x6a   : > { %2138 = vmatpush2.bf16.msra.mxu1 %v5936_v28  ;;  %2164 = vmatprep.subr.bf16.mxu0 %v5947_v31  ;;  %v6029_v28 = vld [vmem:[%s8737_s1 + $0x138] ss:$48 sps:$4 sm:$0xff]   ;;  %v6032_v31 = vld [vmem:[%s8737_s1 + $0x3d0] ss:$48 sps:$4 sm:$0xff]  }
  0x6b   : > { %2139 = vmatprep.subr.bf16.mxu1 %v5944_v30  ;;  %v6037_v30 = vld [vmem:[%s8737_s1 + $0xdc] ss:$48 sps:$4 sm:$0xff]  }
  0x6d   : > { %2165 = vmatpush1.bf16.msra.mxu0 %v5945_v33  ;;  %v6040_v33 = vld [vmem:[%s8737_s1 + $0x374] ss:$48 sps:$4 sm:$0xff]  }
  0x6e   : > { %2140 = vmatpush2.bf16.msra.mxu1 %v5942_v32  ;;  %2166 = vmatprep.subr.bf16.mxu0 %v5953_v36  ;;  %v6035_v32 = vld [vmem:[%s8737_s1 + $0xd8] ss:$48 sps:$4 sm:$0xff]   ;;  %v6038_v36 = vld [vmem:[%s8737_s1 + $0x370] ss:$48 sps:$4 sm:$0xff]  }
  0x6f   : > { %2141 = vmatprep.subr.bf16.mxu1 %v5950_v34  ;;  %v6043_v34 = vld [vmem:[%s8737_s1 + $0x7c] ss:$48 sps:$4 sm:$0xff]  }
  0x71   : > { %2167 = vmatpush1.bf16.msra.mxu0 %v5951_v38  ;;  %v6046_v38 = vld [vmem:[%s8737_s1 + $0x314] ss:$48 sps:$4 sm:$0xff]  }
  0x72   : > { %2142 = vmatpush2.bf16.msra.mxu1 %v5948_v37  ;;  %2193 = vmatprep.subr.bf16.mxu0 %v5956_v39  ;;  %v6041_v37 = vld [vmem:[%s8737_s1 + $0x78] ss:$48 sps:$4 sm:$0xff]   ;;  %v6049_v39 = vld [vmem:[%s8737_s1 + $0x1c] ss:$48 sps:$4 sm:$0xff]  }
  0x73   : > { %2234 = vmatprep.subr.bf16.mxu1 %v5959_v40  ;;  %v6044_v40 = vld [vmem:[%s8737_s1 + $0x310] ss:$48 sps:$4 sm:$0xff]  }
  0x74   : > { %2185 = vmatmul.mubr.bf16.vlgmr.msra.gmra.mxu0 %v6881_v35 }
  0x75   : > { %2144 = vmatmul.mubr.bf16.vlgmr.msra.gmra.mxu1 %v6985_v7  ;;  %2194 = vmatpush1.bf16.msra.mxu0 %v5954_v41  ;;  %v6047_v41 = vld [vmem:[%s8737_s1 + $0x18] ss:$48 sps:$4 sm:$0xff]  }
  0x76   : > { %2235 = vmatpush1.bf16.msra.mxu1 %v5957_v42  ;;  %2195 = vmatprep.subr.bf16.mxu0 %v5962_v43  ;;  %v6052_v42 = vld [vmem:[%s8737_s1 + $0x5bc] ss:$48 sps:$4 sm:$0xff]  }
  0x77   : > { %2236 = vmatprep.subr.bf16.mxu1 %v5965_v44  ;;  %2266 = vmatprep.mubr.bf16.mxu1 %v6690_v2  ;;  %v6055_v43 = vld [vmem:[%s8737_s1 + $0x8bc] ss:$48 sps:$4 sm:$0xff]   ;;  %v6050_v44 = vld [vmem:[%s8737_s1 + $0x5b8] ss:$48 sps:$4 sm:$0xff]  }
  0x78   : > { %2225 = vmatprep.mubr.bf16.mxu0 %v6930_v52 }
  0x79   : > { %2196 = vmatpush1.bf16.msra.mxu0 %v5960_v45  ;;  %v6053_v45 = vld [vmem:[%s8737_s1 + $0x8b8] ss:$48 sps:$4 sm:$0xff]  }
  0x7a   : > { %2237 = vmatpush1.bf16.msra.mxu1 %v5963_v46  ;;  %2197 = vmatprep.subr.bf16.mxu0 %v5968_v47  ;;  %v6058_v46 = vld [vmem:[%s8737_s1 + $0x55c] ss:$48 sps:$4 sm:$0xff]  }
  0x7b   : > { %2238 = vmatprep.subr.bf16.mxu1 %v5971_v48  ;;  %v6061_v47 = vld [vmem:[%s8737_s1 + $0x85c] ss:$48 sps:$4 sm:$0xff]   ;;  %v6056_v48 = vld [vmem:[%s8737_s1 + $0x558] ss:$48 sps:$4 sm:$0xff]  }
  0x7d   : > { %2198 = vmatpush1.bf16.msra.mxu0 %v5966_v49  ;;  %v6059_v49 = vld [vmem:[%s8737_s1 + $0x858] ss:$48 sps:$4 sm:$0xff]  }
  0x7e   : > { %2239 = vmatpush1.bf16.msra.mxu1 %v5969_v50  ;;  %2199 = vmatprep.subr.bf16.mxu0 %v5974_v51  ;;  %v6064_v50 = vld [vmem:[%s8737_s1 + $0x4fc] ss:$48 sps:$4 sm:$0xff]  }
  0x7f   : > { %2240 = vmatprep.subr.bf16.mxu1 %v5977_v53  ;;  %v6067_v51 = vld [vmem:[%s8737_s1 + $0x7fc] ss:$48 sps:$4 sm:$0xff]   ;;  %v6062_v53 = vld [vmem:[%s8737_s1 + $0x4f8] ss:$48 sps:$4 sm:$0xff]  }
  0x81   : > { %2200 = vmatpush1.bf16.msra.mxu0 %v5972_v54  ;;  %v6065_v54 = vld [vmem:[%s8737_s1 + $0x7f8] ss:$48 sps:$4 sm:$0xff]  }
  0x82   : > { %2241 = vmatpush1.bf16.msra.mxu1 %v5975_v55  ;;  %2201 = vmatprep.subr.bf16.mxu0 %v5980_v56  ;;  %v6070_v55 = vld [vmem:[%s8737_s1 + $0x49c] ss:$48 sps:$4 sm:$0xff]  }
  0x83   : > { %2242 = vmatprep.subr.bf16.mxu1 %v5983_v57  ;;  %v6073_v56 = vld [vmem:[%s8737_s1 + $0x79c] ss:$48 sps:$4 sm:$0xff]   ;;  %v6068_v57 = vld [vmem:[%s8737_s1 + $0x498] ss:$48 sps:$4 sm:$0xff]  }
  0x85   : > { %2202 = vmatpush1.bf16.msra.mxu0 %v5978_v58  ;;  %v6071_v58 = vld [vmem:[%s8737_s1 + $0x798] ss:$48 sps:$4 sm:$0xff]  }
  0x86   : > { %2243 = vmatpush1.bf16.msra.mxu1 %v5981_v59  ;;  %2203 = vmatprep.subr.bf16.mxu0 %v5986_v60  ;;  %v6076_v59 = vld [vmem:[%s8737_s1 + $0x43c] ss:$48 sps:$4 sm:$0xff]  }
  0x87   : > { %2244 = vmatprep.subr.bf16.mxu1 %v5989_v61  ;;  %v6079_v60 = vld [vmem:[%s8737_s1 + $0x73c] ss:$48 sps:$4 sm:$0xff]   ;;  %v6074_v61 = vld [vmem:[%s8737_s1 + $0x438] ss:$48 sps:$4 sm:$0xff]  }
  0x89   : > { %2204 = vmatpush1.bf16.msra.mxu0 %v5984_v62  ;;  %v6077_v62 = vld [vmem:[%s8737_s1 + $0x738] ss:$48 sps:$4 sm:$0xff]  }
  0x8a   : > { %2245 = vmatpush1.bf16.msra.mxu1 %v5987_v63  ;;  %2205 = vmatprep.subr.bf16.mxu0 %v5992_v0  ;;  %v6082_v63 = vld [vmem:[%s8737_s1 + $0x3dc] ss:$48 sps:$4 sm:$0xff]  }
  0x8b   : > { %2246 = vmatprep.subr.bf16.mxu1 %v5995_v1  ;;  %v6085_v0 = vld [vmem:[%s8737_s1 + $0x6dc] ss:$48 sps:$4 sm:$0xff]   ;;  %v6080_v1 = vld [vmem:[%s8737_s1 + $0x3d8] ss:$48 sps:$4 sm:$0xff]  }
  0x8d   : > { %2206 = vmatpush1.bf16.msra.mxu0 %v5990_v3  ;;  %v6083_v3 = vld [vmem:[%s8737_s1 + $0x6d8] ss:$48 sps:$4 sm:$0xff]  }
  0x8e   : > { %2247 = vmatpush1.bf16.msra.mxu1 %v5993_v4  ;;  %2207 = vmatprep.subr.bf16.mxu0 %v5998_v5  ;;  %v6088_v4 = vld [vmem:[%s8737_s1 + $0x37c] ss:$48 sps:$4 sm:$0xff]  }
  0x8f   : > { %2248 = vmatprep.subr.bf16.mxu1 %v6001_v6  ;;  %v6091_v5 = vld [vmem:[%s8737_s1 + $0x67c] ss:$48 sps:$4 sm:$0xff]   ;;  %v6086_v6 = vld [vmem:[%s8737_s1 + $0x378] ss:$48 sps:$4 sm:$0xff]  }
  0x91   : > { %2208 = vmatpush1.bf16.msra.mxu0 %v5996_v8  ;;  %v6089_v8 = vld [vmem:[%s8737_s1 + $0x678] ss:$48 sps:$4 sm:$0xff]  }
  0x92   : > { %2249 = vmatpush1.bf16.msra.mxu1 %v5999_v9  ;;  %2209 = vmatprep.subr.bf16.mxu0 %v6004_v10  ;;  %v6094_v9 = vld [vmem:[%s8737_s1 + $0x31c] ss:$48 sps:$4 sm:$0xff]  }
  0x93   : > { %2275 = vmatprep.subr.bf16.mxu1 %v6007_v11  ;;  %v6097_v10 = vld [vmem:[%s8737_s1 + $0x61c] ss:$48 sps:$4 sm:$0xff]   ;;  %v6092_v11 = vld [vmem:[%s8737_s1 + $0x318] ss:$48 sps:$4 sm:$0xff]  }
  0x95   : > { %2267 = vmatmul.mubr.bf16.vlgmr.msra.gmra.mxu1 %v6881_v35  ;;  %2210 = vmatpush2.bf16.msra.mxu0 %v6002_v12  ;;  %v6019_v35 = vld [vmem:[%s8737_s1 + $0x1fc] ss:$48 sps:$4 sm:$0xff]   ;;  %v6095_v12 = vld [vmem:[%s8737_s1 + $0x618] ss:$48 sps:$4 sm:$0xff]  }
  0x96   : > { %2276 = vmatpush1.bf16.msra.mxu1 %v6005_v13  ;;  %2211 = vmatprep.subr.bf16.mxu0 %v6010_v14  ;;  %v6100_v13 = vld [vmem:[%s8737_s1 + $0x2c4] ss:$48 sps:$4 sm:$0xff]  }
  0x97   : > { %2277 = vmatprep.subr.bf16.mxu1 %v6013_v15  ;;  %2307 = vmatprep.mubr.bf16.mxu1 %v6930_v52  ;;  %v6103_v14 = vld [vmem:[%s8737_s1 + $0x8c4] ss:$48 sps:$4 sm:$0xff]   ;;  %v6098_v15 = vld [vmem:[%s8737_s1 + $0x2c0] ss:$48 sps:$4 sm:$0xff]  }
  0x99   : > { %2212 = vmatpush2.bf16.msra.mxu0 %v6008_v16  ;;  %v6101_v16 = vld [vmem:[%s8737_s1 + $0x8c0] ss:$48 sps:$4 sm:$0xff]  }
  0x9a   : > { %2278 = vmatpush1.bf16.msra.mxu1 %v6011_v17  ;;  %2213 = vmatprep.subr.bf16.mxu0 %v6016_v18  ;;  %v6106_v17 = vld [vmem:[%s8737_s1 + $0x264] ss:$48 sps:$4 sm:$0xff]  }
  0x9b   : > { %2279 = vmatprep.subr.bf16.mxu1 %v6019_v35  ;;  %v6109_v18 = vld [vmem:[%s8737_s1 + $0x864] ss:$48 sps:$4 sm:$0xff]   ;;  %v7395_v35 = vld [vmem:[%s6854_s13 + $0x8] ss:$0 sps:$4 sm:$0xff]   ;;  %s6632_s13 = sshll.u32 %s6691_s22, 4  ;;  %s6633_s13 = int_to_ptr.vmem [resolvable:$false] %s6632_s13 }
  0x9c   : > { %s6634_s26 = scalar_lea.vmem %s6633_s13, 768  ;;  %p6635_p0 = scmp.lt.s32.totalorder %s4987_s12, %s6633_s13 }
  0x9d   : > { %2214 = vmatpush2.bf16.msra.mxu0 %v6014_v19  ;;  %v6104_v19 = vld [vmem:[%s8737_s1 + $0x260] ss:$48 sps:$4 sm:$0xff]   ;;  %p6636_p1 = scmp.lt.s32.totalorder %s6634_s26, %s6628_s25 }
  0x9e   : > { %2280 = vmatpush1.bf16.msra.mxu1 %v6017_v20  ;;  %2215 = vmatprep.subr.bf16.mxu0 %v6022_v21  ;;  %v6107_v20 = vld [vmem:[%s8737_s1 + $0x860] ss:$48 sps:$4 sm:$0xff]   ;;  %v6112_v21 = vld [vmem:[%s8737_s1 + $0x204] ss:$48 sps:$4 sm:$0xff]  }
  0x9f   : > { %2281 = vmatprep.subr.bf16.mxu1 %v6025_v22  ;;  %v6115_v22 = vld [vmem:[%s8737_s1 + $0x804] ss:$48 sps:$4 sm:$0xff]   ;;  %p6637_p2 = por %p6636_p1, %p6635_p0 }
  0xa1   : > { %2216 = vmatpush2.bf16.msra.mxu0 %v6020_v23  ;;  %v6110_v23 = vld [vmem:[%s8737_s1 + $0x200] ss:$48 sps:$4 sm:$0xff]   ;;  %p6638_p3 = pnand %p6637_p2, %p6631_p13 }
  0xa2   : > { %2282 = vmatpush1.bf16.msra.mxu1 %v6023_v24  ;;  %2217 = vmatprep.subr.bf16.mxu0 %v6028_v25  ;;  %v6113_v24 = vld [vmem:[%s8737_s1 + $0x800] ss:$48 sps:$4 sm:$0xff]   ;;  %v6118_v25 = vld [vmem:[%s8737_s1 + $0x1a4] ss:$48 sps:$4 sm:$0xff]  }
  0xa3   : > { %2283 = vmatprep.subr.bf16.mxu1 %v6031_v26  ;;  %v6121_v26 = vld [vmem:[%s8737_s1 + $0x7a4] ss:$48 sps:$4 sm:$0xff]  }
  0xa5   : > { %2218 = vmatpush2.bf16.msra.mxu0 %v6026_v27  ;;  %v6116_v27 = vld [vmem:[%s8737_s1 + $0x1a0] ss:$48 sps:$4 sm:$0xff]  }
  0xa6   : > { %2284 = vmatpush1.bf16.msra.mxu1 %v6029_v28  ;;  %2219 = vmatprep.subr.bf16.mxu0 %v6034_v29  ;;  %v6119_v28 = vld [vmem:[%s8737_s1 + $0x7a0] ss:$48 sps:$4 sm:$0xff]   ;;  %v6124_v29 = vld [vmem:[%s8737_s1 + $0x144] ss:$48 sps:$4 sm:$0xff]  }
  0xa7   : > { %2285 = vmatprep.subr.bf16.mxu1 %v6037_v30  ;;  %v6127_v30 = vld [vmem:[%s8737_s1 + $0x744] ss:$48 sps:$4 sm:$0xff]  }
  0xa9   : > { %2220 = vmatpush2.bf16.msra.mxu0 %v6032_v31  ;;  %v6122_v31 = vld [vmem:[%s8737_s1 + $0x140] ss:$48 sps:$4 sm:$0xff]  }
  0xaa   : > { %2286 = vmatpush1.bf16.msra.mxu1 %v6035_v32  ;;  %2221 = vmatprep.subr.bf16.mxu0 %v6040_v33  ;;  %v6125_v32 = vld [vmem:[%s8737_s1 + $0x740] ss:$48 sps:$4 sm:$0xff]   ;;  %v6130_v33 = vld [vmem:[%s8737_s1 + $0xe4] ss:$48 sps:$4 sm:$0xff]  }
  0xab   : > { %2287 = vmatprep.subr.bf16.mxu1 %v6043_v34  ;;  %v6133_v34 = vld [vmem:[%s8737_s1 + $0x6e4] ss:$48 sps:$4 sm:$0xff]  }
  0xad   : > { %2222 = vmatpush2.bf16.msra.mxu0 %v6038_v36  ;;  %v6128_v36 = vld [vmem:[%s8737_s1 + $0xe0] ss:$48 sps:$4 sm:$0xff]  }
  0xae   : > { %2288 = vmatpush1.bf16.msra.mxu1 %v6041_v37  ;;  %2223 = vmatprep.subr.bf16.mxu0 %v6046_v38  ;;  %v6131_v37 = vld [vmem:[%s8737_s1 + $0x6e0] ss:$48 sps:$4 sm:$0xff]   ;;  %v6136_v38 = vld [vmem:[%s8737_s1 + $0x84] ss:$48 sps:$4 sm:$0xff]  }
  0xaf   : > { %2289 = vmatprep.subr.bf16.mxu1 %v6049_v39  ;;  %v6139_v39 = vld [vmem:[%s8737_s1 + $0x684] ss:$48 sps:$4 sm:$0xff]  }
  0xb1   : > { %2224 = vmatpush2.bf16.msra.mxu0 %v6044_v40  ;;  %v6134_v40 = vld [vmem:[%s8737_s1 + $0x80] ss:$48 sps:$4 sm:$0xff]  }
  0xb2   : > { %2290 = vmatpush1.bf16.msra.mxu1 %v6047_v41  ;;  %2316 = vmatprep.subr.bf16.mxu0 %v6055_v43  ;;  %v6137_v41 = vld [vmem:[%s8737_s1 + $0x680] ss:$48 sps:$4 sm:$0xff]   ;;  %v6145_v43 = vld [vmem:[%s8737_s1 + $0x624] ss:$48 sps:$4 sm:$0xff]  }
  0xb3   : > { %2291 = vmatprep.subr.bf16.mxu1 %v6052_v42  ;;  %v6142_v42 = vld [vmem:[%s8737_s1 + $0x24] ss:$48 sps:$4 sm:$0xff]  }
  0xb4   : > { %2226 = vmatmul.mubr.bf16.vlgmr.msra.gmra.mxu0 %v6985_v7 }
  0xb5   : > { %2317 = vmatpush1.bf16.msra.mxu0 %v6053_v45  ;;  %2348 = vmatprep.mubr.bf16.mxu0 %v6690_v2  ;;  %v6143_v45 = vld [vmem:[%s8737_s1 + $0x620] ss:$48 sps:$4 sm:$0xff]  }
  0xb6   : > { %2292 = vmatpush2.bf16.msra.mxu1 %v6050_v44  ;;  %2318 = vmatprep.subr.bf16.mxu0 %v6061_v47  ;;  %v6140_v44 = vld [vmem:[%s8737_s1 + $0x20] ss:$48 sps:$4 sm:$0xff]   ;;  %v6151_v47 = vld [vmem:[%s8737_s1 + $0x2cc] ss:$48 sps:$4 sm:$0xff]  }
  0xb7   : > { %2293 = vmatprep.subr.bf16.mxu1 %v6058_v46  ;;  %v6148_v46 = vld [vmem:[%s8737_s1 + $0x5c4] ss:$48 sps:$4 sm:$0xff]  }
  0xb9   : > { %2319 = vmatpush1.bf16.msra.mxu0 %v6059_v49  ;;  %v6149_v49 = vld [vmem:[%s8737_s1 + $0x2c8] ss:$48 sps:$4 sm:$0xff]  }
  0xba   : > { %2294 = vmatpush2.bf16.msra.mxu1 %v6056_v48  ;;  %2320 = vmatprep.subr.bf16.mxu0 %v6067_v51  ;;  %v6146_v48 = vld [vmem:[%s8737_s1 + $0x5c0] ss:$48 sps:$4 sm:$0xff]   ;;  %v6157_v51 = vld [vmem:[%s8737_s1 + $0x26c] ss:$48 sps:$4 sm:$0xff]  }
  0xbb   : > { %2295 = vmatprep.subr.bf16.mxu1 %v6064_v50  ;;  %v6154_v50 = vld [vmem:[%s8737_s1 + $0x564] ss:$48 sps:$4 sm:$0xff]  }
  0xbd   : > { %2321 = vmatpush1.bf16.msra.mxu0 %v6065_v54  ;;  %v6152_v54 = vld [vmem:[%s8737_s1 + $0x560] ss:$48 sps:$4 sm:$0xff]  }
  0xbe   : > { %2296 = vmatpush2.bf16.msra.mxu1 %v6062_v53  ;;  %2322 = vmatprep.subr.bf16.mxu0 %v6073_v56  ;;  %v6160_v56 = vld [vmem:[%s8737_s1 + $0x504] ss:$48 sps:$4 sm:$0xff]  }
  0xbf   : > { %2297 = vmatprep.subr.bf16.mxu1 %v6070_v55  ;;  %v6155_v55 = vld [vmem:[%s8737_s1 + $0x268] ss:$48 sps:$4 sm:$0xff]  }
  0xc1   : > { %2323 = vmatpush1.bf16.msra.mxu0 %v6071_v58  ;;  %v6163_v58 = vld [vmem:[%s8737_s1 + $0x20c] ss:$48 sps:$4 sm:$0xff]  }
  0xc2   : > { %2298 = vmatpush2.bf16.msra.mxu1 %v6068_v57  ;;  %2324 = vmatprep.subr.bf16.mxu0 %v6079_v60  ;;  %v6158_v60 = vld [vmem:[%s8737_s1 + $0x500] ss:$48 sps:$4 sm:$0xff]  }
  0xc3   : > { %2299 = vmatprep.subr.bf16.mxu1 %v6076_v59 }
  0xc5   : > { %2325 = vmatpush1.bf16.msra.mxu0 %v6077_v62  ;;  %v6166_v62 = vld [vmem:[%s8737_s1 + $0x4a4] ss:$48 sps:$4 sm:$0xff]  }
  0xc6   : > { %2300 = vmatpush2.bf16.msra.mxu1 %v6074_v61  ;;  %2326 = vmatprep.subr.bf16.mxu0 %v6085_v0  ;;  %v6161_v61 = vld [vmem:[%s8737_s1 + $0x208] ss:$48 sps:$4 sm:$0xff]   ;;  %v6164_v0 = vld [vmem:[%s8737_s1 + $0x4a0] ss:$48 sps:$4 sm:$0xff]  }
  0xc7   : > { %2301 = vmatprep.subr.bf16.mxu1 %v6082_v63 }
  0xc9   : > { %2327 = vmatpush1.bf16.msra.mxu0 %v6083_v3  ;;  %v6172_v3 = vld [vmem:[%s8737_s1 + $0x444] ss:$48 sps:$4 sm:$0xff]  }
  0xca   : > { %2302 = vmatpush2.bf16.msra.mxu1 %v6080_v1  ;;  %2328 = vmatprep.subr.bf16.mxu0 %v6091_v5  ;;  %v6167_v1 = vld [vmem:[%s8737_s1 + $0x1a8] ss:$48 sps:$4 sm:$0xff]   ;;  %v6170_v5 = vld [vmem:[%s8737_s1 + $0x440] ss:$48 sps:$4 sm:$0xff]  }
  0xcb   : > { %2303 = vmatprep.subr.bf16.mxu1 %v6088_v4  ;;  %v6175_v4 = vld [vmem:[%s8737_s1 + $0x14c] ss:$48 sps:$4 sm:$0xff]  }
  0xcd   : > { %2329 = vmatpush1.bf16.msra.mxu0 %v6089_v8  ;;  %v6178_v8 = vld [vmem:[%s8737_s1 + $0x3e4] ss:$48 sps:$4 sm:$0xff]  }
  0xce   : > { %2304 = vmatpush2.bf16.msra.mxu1 %v6086_v6  ;;  %2330 = vmatprep.subr.bf16.mxu0 %v6097_v10  ;;  %v6173_v6 = vld [vmem:[%s8737_s1 + $0x148] ss:$48 sps:$4 sm:$0xff]   ;;  %v6176_v10 = vld [vmem:[%s8737_s1 + $0x3e0] ss:$48 sps:$4 sm:$0xff]  }
  0xcf   : > { %2305 = vmatprep.subr.bf16.mxu1 %v6094_v9  ;;  %v6181_v9 = vld [vmem:[%s8737_s1 + $0xec] ss:$48 sps:$4 sm:$0xff]  }
  0xd1   : > { %2331 = vmatpush1.bf16.msra.mxu0 %v6095_v12  ;;  %v6184_v12 = vld [vmem:[%s8737_s1 + $0x384] ss:$48 sps:$4 sm:$0xff]  }
  0xd2   : > { %2306 = vmatpush2.bf16.msra.mxu1 %v6092_v11  ;;  %2357 = vmatprep.subr.bf16.mxu0 %v6100_v13  ;;  %v6179_v11 = vld [vmem:[%s8737_s1 + $0xe8] ss:$48 sps:$4 sm:$0xff]   ;;  %v518_v13 = vlaneseq }
  0xd3   : > { %2398 = vmatprep.subr.bf16.mxu1 %v6103_v14  ;;  %v6187_v14 = vld [vmem:[%s8737_s1 + $0x8c] ss:$48 sps:$4 sm:$0xff]  }
  0xd4   : > { %2349 = vmatmul.mubr.bf16.vlgmr.msra.gmra.mxu0 %v7395_v35 }
  0xd5   : > { %2308 = vmatmul.mubr.bf16.vlgmr.msra.gmra.mxu1 %v6985_v7  ;;  %2358 = vmatpush1.bf16.msra.mxu0 %v6098_v15  ;;  %v6182_v15 = vld [vmem:[%s8737_s1 + $0x380] ss:$48 sps:$4 sm:$0xff]  }
  0xd6   : > { %2399 = vmatpush1.bf16.msra.mxu1 %v6101_v16  ;;  %2359 = vmatprep.subr.bf16.mxu0 %v6106_v17  ;;  %v6185_v16 = vld [vmem:[%s8737_s1 + $0x88] ss:$48 sps:$4 sm:$0xff]   ;;  %v6190_v17 = vld [vmem:[%s8737_s1 + $0x324] ss:$48 sps:$4 sm:$0xff]  }
  0xd7   : > { %2400 = vmatprep.subr.bf16.mxu1 %v6109_v18  ;;  %2430 = vmatprep.mubr.bf16.mxu1 %v6690_v2  ;;  %v7571_v18 = vshrl.u32 %v518_v13, 7 }
  0xd8   : > { %2389 = vmatprep.mubr.bf16.mxu0 %v6930_v52 }
  0xd9   : > { %2360 = vmatpush1.bf16.msra.mxu0 %v6104_v19  ;;  %v6193_v19 = vld [vmem:[%s8737_s1 + $0x2c] ss:$48 sps:$4 sm:$0xff]  }
  0xda   : > { %2401 = vmatpush1.bf16.msra.mxu1 %v6107_v20  ;;  %2361 = vmatprep.subr.bf16.mxu0 %v6112_v21  ;;  %v6188_v20 = vld [vmem:[%s8737_s1 + $0x320] ss:$48 sps:$4 sm:$0xff]   ;;  %v6191_v21 = vld [vmem:[%s8737_s1 + $0x28] ss:$48 sps:$4 sm:$0xff]  }
  0xdb   : > { %2402 = vmatprep.subr.bf16.mxu1 %v6115_v22  ;;  %v7585_v22 = vld [vmem:[%s8738_s2] sm:$0xff] }
  0xdd   : > { %2362 = vmatpush1.bf16.msra.mxu0 %v6110_v23  ;;  %v7588_v23 = vsub.s32 0, %v7571_v18 }
  0xde   : > { %2403 = vmatpush1.bf16.msra.mxu1 %v6113_v24  ;;  %2363 = vmatprep.subr.bf16.mxu0 %v6118_v25  ;;  %v6196_v24 = vld [vmem:[%s8737_s1 + $0x5cc] ss:$48 sps:$4 sm:$0xff]  }
  0xdf   : > { %2404 = vmatprep.subr.bf16.mxu1 %v6121_v26  ;;  %v6199_v25 = vld [vmem:[%s8737_s1 + $0x8cc] ss:$48 sps:$4 sm:$0xff]   ;;  %v6194_v26 = vld [vmem:[%s8737_s1 + $0x5c8] ss:$48 sps:$4 sm:$0xff]  }
  0xe1   : > { %2364 = vmatpush1.bf16.msra.mxu0 %v6116_v27  ;;  %v6197_v27 = vld [vmem:[%s8737_s1 + $0x8c8] ss:$48 sps:$4 sm:$0xff]  }
  0xe2   : > { %2405 = vmatpush1.bf16.msra.mxu1 %v6119_v28  ;;  %2365 = vmatprep.subr.bf16.mxu0 %v6124_v29  ;;  %v521_v28 = vrot.slane %v7585_v22, %v7588_v23  ;;  %v6202_v29 = vld [vmem:[%s8737_s1 + $0x56c] ss:$48 sps:$4 sm:$0xff]  }
  0xe3   : > { %2406 = vmatprep.subr.bf16.mxu1 %v6127_v30  ;;  %v6205_v30 = vld [vmem:[%s8737_s1 + $0x86c] ss:$48 sps:$4 sm:$0xff]  }
  0xe5   : > { %2366 = vmatpush1.bf16.msra.mxu0 %v6122_v31  ;;  %v6200_v31 = vld [vmem:[%s8737_s1 + $0x568] ss:$48 sps:$4 sm:$0xff]  }
  0xe6   : > { %2407 = vmatpush1.bf16.msra.mxu1 %v6125_v32  ;;  %2367 = vmatprep.subr.bf16.mxu0 %v6130_v33  ;;  %v6203_v33 = vld [vmem:[%s8737_s1 + $0x868] ss:$48 sps:$4 sm:$0xff]  }
  0xe7   : > { %2408 = vmatprep.subr.bf16.mxu1 %v6133_v34  ;;  %v6208_v34 = vld [vmem:[%s8737_s1 + $0x50c] ss:$48 sps:$4 sm:$0xff]  }
  0xe9   : > { %2368 = vmatpush1.bf16.msra.mxu0 %v6128_v36  ;;  %v6211_v36 = vld [vmem:[%s8737_s1 + $0x80c] ss:$48 sps:$4 sm:$0xff]  }
  0xea   : > { %2409 = vmatpush1.bf16.msra.mxu1 %v6131_v37  ;;  %2369 = vmatprep.subr.bf16.mxu0 %v6136_v38 }
  0xeb   : > { %2410 = vmatprep.subr.bf16.mxu1 %v6139_v39 }
  0xed   : > { %2370 = vmatpush1.bf16.msra.mxu0 %v6134_v40  ;;  %v6206_v40 = vld [vmem:[%s8737_s1 + $0x508] ss:$48 sps:$4 sm:$0xff]  }
  0xee   : > { %2411 = vmatpush1.bf16.msra.mxu1 %v6137_v41  ;;  %2371 = vmatprep.subr.bf16.mxu0 %v6142_v42  ;;  %v6209_v41 = vld [vmem:[%s8737_s1 + $0x808] ss:$48 sps:$4 sm:$0xff]  }
  0xef   : > { %2412 = vmatprep.subr.bf16.mxu1 %v6145_v43  ;;  %v6214_v43 = vld [vmem:[%s8737_s1 + $0x4ac] ss:$48 sps:$4 sm:$0xff]  }
  0xf1   : > { %2372 = vmatpush1.bf16.msra.mxu0 %v6140_v44  ;;  %v6217_v44 = vld [vmem:[%s8737_s1 + $0x7ac] ss:$48 sps:$4 sm:$0xff]  }
  0xf2   : > { %2413 = vmatpush1.bf16.msra.mxu1 %v6143_v45  ;;  %2373 = vmatprep.subr.bf16.mxu0 %v6148_v46  ;;  %v6212_v46 = vld [vmem:[%s8737_s1 + $0x4a8] ss:$48 sps:$4 sm:$0xff]  }
  0xf3   : > { %2439 = vmatprep.subr.bf16.mxu1 %v6151_v47  ;;  %v6220_v47 = vld [vmem:[%s8737_s1 + $0x44c] ss:$48 sps:$4 sm:$0xff]  }
  0xf5   : > { %v7496_v53 = vpop.f32.mrf.mxu1  ;;  %2431 = vmatmul.mubr.bf16.vlgmr.msra.gmra.mxu1 %v7395_v35  ;;  %2374 = vmatpush2.bf16.msra.mxu0 %v6146_v48  ;;  %v6223_v48 = vld [vmem:[%s8737_s1 + $0x74c] ss:$48 sps:$4 sm:$0xff]  }
  0xf6   : > { %2440 = vmatpush1.bf16.msra.mxu1 %v6149_v49  ;;  %2375 = vmatprep.subr.bf16.mxu0 %v6154_v50  ;;  %v7652_v49 = vsub.s32 1, %v7571_v18  ;;  %v6218_v50 = vld [vmem:[%s8737_s1 + $0x448] ss:$48 sps:$4 sm:$0xff]  }
  0xf7   : > { %v7508_v57 = vpop.f32.mrf.mxu1  ;;  %2441 = vmatprep.subr.bf16.mxu1 %v6157_v51  ;;  %2471 = vmatprep.mubr.bf16.mxu1 %v6930_v52  ;;  %v6169_v52 = vld [vmem:[%s8737_s1 + $0x1ac] ss:$48 sps:$4 sm:$0xff]   ;;  %v6221_v51 = vld [vmem:[%s8737_s1 + $0x748] ss:$48 sps:$4 sm:$0xff]  }
  0xf9   : > { %v2108_v59 = vpop.f32.mrf.mxu1  ;;  %2376 = vmatpush2.bf16.msra.mxu0 %v6152_v54  ;;  %v6229_v54 = vld [vmem:[%s8737_s1 + $0x6ec] ss:$48 sps:$4 sm:$0xff]  }
  0xfa   : > { %2442 = vmatpush1.bf16.msra.mxu1 %v6155_v55  ;;  %2377 = vmatprep.subr.bf16.mxu0 %v6160_v56  ;;  %v525_v55 = vrot.slane %v7585_v22, %v7652_v49  ;;  %v6224_v56 = vld [vmem:[%s8737_s1 + $0x3e8] ss:$48 sps:$4 sm:$0xff]   ;;  %v6232_v59 = vld [vmem:[%s8737_s1 + $0x38c] ss:$48 sps:$4 sm:$0xff]  }
  0xfb   : > { %v2109_v63 = vpop.f32.mrf.mxu1  ;;  %2443 = vmatprep.subr.bf16.mxu1 %v6163_v58  ;;  %v6227_v58 = vld [vmem:[%s8737_s1 + $0x6e8] ss:$48 sps:$4 sm:$0xff]  }
  0xfc   : > { %v6233_v63 = vld [vmem:[%s8737_s1 + $0x688] ss:$48 sps:$4 sm:$0xff]  }
  0xfd   : > { %2378 = vmatpush2.bf16.msra.mxu0 %v6158_v60  ;;  %v6235_v60 = vld [vmem:[%s8737_s1 + $0x68c] ss:$48 sps:$4 sm:$0xff]  }
  0xfe   : > { %2444 = vmatpush1.bf16.msra.mxu1 %v6161_v61  ;;  %2379 = vmatprep.subr.bf16.mxu0 %v6166_v62  ;;  %v6230_v62 = vld [vmem:[%s8737_s1 + $0x388] ss:$48 sps:$4 sm:$0xff]  }
  0xff   : > { %2445 = vmatprep.subr.bf16.mxu1 %v6169_v52  ;;  %v6238_v52 = vld [vmem:[%s8737_s1 + $0x32c] ss:$48 sps:$4 sm:$0xff]  }
 0x101   : > { %2380 = vmatpush2.bf16.msra.mxu0 %v6164_v0  ;;  %v6241_v0 = vld [vmem:[%s8737_s1 + $0x62c] ss:$48 sps:$4 sm:$0xff]  }
 0x102   : > { %2446 = vmatpush1.bf16.msra.mxu1 %v6167_v1  ;;  %2381 = vmatprep.subr.bf16.mxu0 %v6172_v3  ;;  %v6236_v3 = vld [vmem:[%s8737_s1 + $0x328] ss:$48 sps:$4 sm:$0xff]  }
 0x103   : > { %2447 = vmatprep.subr.bf16.mxu1 %v6175_v4  ;;  %v6239_v4 = vld [vmem:[%s8737_s1 + $0x628] ss:$48 sps:$4 sm:$0xff]  }
 0x105   : > { %2382 = vmatpush2.bf16.msra.mxu0 %v6170_v5  ;;  %v6244_v5 = vld [vmem:[%s8739_s3 + $0xac] ss:$12 sps:$4 sm:$0xff]  }
 0x106   : > { %2448 = vmatpush1.bf16.msra.mxu1 %v6173_v6  ;;  %2383 = vmatprep.subr.bf16.mxu0 %v6178_v8  ;;  %v6242_v8 = vld [vmem:[%s8739_s3 + $0xa8] ss:$12 sps:$4 sm:$0xff]  }
 0x107   : > { %2449 = vmatprep.subr.bf16.mxu1 %v6181_v9  ;;  %v532_v9 = vsub.s32 3, %v7571_v18 }
 0x109   : > { %2384 = vmatpush2.bf16.msra.mxu0 %v6176_v10  ;;  %v6245_v10 = vld [vmem:[%s8739_s3 + $0x228] ss:$12 sps:$4 sm:$0xff]   ;;  %v533_v13 = vrot.slane %v7585_v22, %v532_v9 }
 0x10a   : > { %2450 = vmatpush1.bf16.msra.mxu1 %v6179_v11  ;;  %2385 = vmatprep.subr.bf16.mxu0 %v6184_v12  ;;  %v6250_v11 = vld [vmem:[%s8739_s3 + $0x94] ss:$12 sps:$4 sm:$0xff]  }
 0x10b   : > { %2451 = vmatprep.subr.bf16.mxu1 %v6187_v14  ;;  %v6248_v14 = vld [vmem:[%s8739_s3 + $0x90] ss:$12 sps:$4 sm:$0xff]  }
 0x10d   : > { %2386 = vmatpush2.bf16.msra.mxu0 %v6182_v15  ;;  %v6253_v15 = vld [vmem:[%s8739_s3 + $0x214] ss:$12 sps:$4 sm:$0xff]  }
 0x10e   : > { %2452 = vmatpush1.bf16.msra.mxu1 %v6185_v16  ;;  %2387 = vmatprep.subr.bf16.mxu0 %v6190_v17 }
 0x10f   : > { %2453 = vmatprep.subr.bf16.mxu1 %v6193_v19  ;;  %v6251_v19 = vld [vmem:[%s8739_s3 + $0x210] ss:$12 sps:$4 sm:$0xff]  }
 0x111   : > { %2388 = vmatpush2.bf16.msra.mxu0 %v6188_v20  ;;  %v6256_v20 = vld [vmem:[%s8739_s3 + $0x7c] ss:$12 sps:$4 sm:$0xff]  }
 0x112   : > { %2454 = vmatpush1.bf16.msra.mxu1 %v6191_v21  ;;  %2480 = vmatprep.subr.bf16.mxu0 %v6199_v25 }
 0x113   : > { %2455 = vmatprep.subr.bf16.mxu1 %v6196_v24 }
 0x114   : > { %v2063_v32 = vpop.f32.mrf.mxu0  ;;  %2390 = vmatmul.mubr.bf16.vlgmr.msra.gmra.mxu0 %v6985_v7 }
 0x115   : > { %v2064_v37 = vadd.f32 %v2063_v32, %v521_v28  ;;  %2481 = vmatpush1.bf16.msra.mxu0 %v6197_v27  ;;  %2512 = vmatprep.mubr.bf16.mxu0 %v6690_v2  ;;  %v6215_v2 = vld [vmem:[%s8737_s1 + $0x7a8] ss:$48 sps:$4 sm:$0xff]   ;;  %v6262_v32 = vld [vmem:[%s8739_s3 + $0x64] ss:$12 sps:$4 sm:$0xff]  }
 0x116   : > { %2456 = vmatpush2.bf16.msra.mxu1 %v6194_v26  ;;  %v2065_v38 = vpop.f32.mrf.mxu0  ;;  %2482 = vmatprep.subr.bf16.mxu0 %v6205_v30  ;;  %v6257_v28 = vld [vmem:[%s8739_s3 + $0x1f8] ss:$12 sps:$4 sm:$0xff]  }
 0x117   : > { %2457 = vmatprep.subr.bf16.mxu1 %v6202_v29  ;;  %v7624_v39 = vadd.f32 %v7496_v53, %v2064_v37  ;;  %v6226_v53 = vld [vmem:[%s8737_s1 + $0x3ec] ss:$48 sps:$4 sm:$0xff]   ;;  %v2066_v61 = vadd.f32 %v2065_v38, %v525_v55  ;;  %v6289_v55 = vld [vmem:[%s8739_s3 + $0x184] ss:$12 sps:$4 sm:$0xff]  }
 0x118   : > { %v2067_v42 = vpop.f32.mrf.mxu0  ;;  %v6260_v37 = vld [vmem:[%s8739_s3 + $0x60] ss:$12 sps:$4 sm:$0xff]  }
 0x119   : > { %2483 = vmatpush1.bf16.msra.mxu0 %v6203_v33  ;;  %v2107_v1 = vadd.f32 %v7508_v57, %v2066_v61  ;;  %v6247_v57 = vld [vmem:[%s8739_s3 + $0x22c] ss:$12 sps:$4 sm:$0xff]   ;;  %v6265_v33 = vld [vmem:[%s8739_s3 + $0x1e4] ss:$12 sps:$4 sm:$0xff]   ;;  %v6266_v42 = vld [vmem:[%s8739_s3 + $0x48] ss:$12 sps:$4 sm:$0xff]  }
 0x11a   : > { %2458 = vmatpush2.bf16.msra.mxu1 %v6200_v31  ;;  %v2068_v45 = vpop.f32.mrf.mxu0  ;;  %2484 = vmatprep.subr.bf16.mxu0 %v6211_v36  ;;  %v6263_v38 = vld [vmem:[%s8739_s3 + $0x1e0] ss:$12 sps:$4 sm:$0xff]   ;;  %v6290_v61 = vld [vmem:[%s8739_s3 + $0x168] ss:$12 sps:$4 sm:$0xff]  }
 0x11b   : > { %2459 = vmatprep.subr.bf16.mxu1 %v6208_v34  ;;  %v2522_v6 = vmax.f32 %v2107_v1, 0.0  ;;  %v6277_v45 = vld [vmem:[%s8739_s3 + $0x1b4] ss:$12 sps:$4 sm:$0xff]  }
 0x11d   : > { %2485 = vmatpush1.bf16.msra.mxu0 %v6209_v41  ;;  %v7715_v12 = vpack.c.bf16 %v2522_v6, %v2522_v6  ;;  %v6271_v41 = vld [vmem:[%s8739_s3 + $0x1cc] ss:$12 sps:$4 sm:$0xff]   ;;  %v6307_v6 = vld [vmem:[%s8739_s3 + $0x2bc] ss:$12 sps:$4 sm:$0xff]  }
 0x11e   : > { %2460 = vmatpush2.bf16.msra.mxu1 %v6206_v40  ;;  %2486 = vmatprep.subr.bf16.mxu0 %v6217_v44  ;;  %v6268_v40 = vld [vmem:[%s8739_s3 + $0x4c] ss:$12 sps:$4 sm:$0xff]   ;;  %v6274_v44 = vld [vmem:[%s8739_s3 + $0x34] ss:$12 sps:$4 sm:$0xff]  }
 0x11f   : > { %2461 = vmatprep.subr.bf16.mxu1 %v6214_v43  ;;  %v6269_v43 = vld [vmem:[%s8739_s3 + $0x1c8] ss:$12 sps:$4 sm:$0xff]  }
 0x121   : > { %2487 = vmatpush1.bf16.msra.mxu0 %v6215_v2  ;;  %v6272_v2 = vld [vmem:[%s8739_s3 + $0x30] ss:$12 sps:$4 sm:$0xff]  }
 0x122   : > { %2462 = vmatpush2.bf16.msra.mxu1 %v6212_v46  ;;  %2488 = vmatprep.subr.bf16.mxu0 %v6223_v48  ;;  %v7782_v46 = vsub.s32 2, %v7571_v18  ;;  %v6280_v48 = vld [vmem:[%s8739_s3 + $0x1c] ss:$12 sps:$4 sm:$0xff]  }
 0x123   : > { %2463 = vmatprep.subr.bf16.mxu1 %v6220_v47  ;;  %v6275_v47 = vld [vmem:[%s8739_s3 + $0x1b0] ss:$12 sps:$4 sm:$0xff]  }
 0x125   : > { %2489 = vmatpush1.bf16.msra.mxu0 %v6221_v51  ;;  %v6278_v51 = vld [vmem:[%s8739_s3 + $0x18] ss:$12 sps:$4 sm:$0xff]  }
 0x126   : > { %2464 = vmatpush2.bf16.msra.mxu1 %v6218_v50  ;;  %2490 = vmatprep.subr.bf16.mxu0 %v6229_v54  ;;  %v6283_v50 = vld [vmem:[%s8739_s3 + $0x19c] ss:$12 sps:$4 sm:$0xff]   ;;  %v6286_v54 = vld [vmem:[%s8739_s3 + $0x4] ss:$12 sps:$4 sm:$0xff]  }
 0x127   : > { %2465 = vmatprep.subr.bf16.mxu1 %v6226_v53  ;;  %v6281_v53 = vld [vmem:[%s8739_s3 + $0x198] ss:$12 sps:$4 sm:$0xff]  }
 0x129   : > { %2491 = vmatpush1.bf16.msra.mxu0 %v6227_v58  ;;  %v6287_v58 = vld [vmem:[%s8739_s3 + $0x180] ss:$12 sps:$4 sm:$0xff]  }
 0x12a   : > { %2466 = vmatpush2.bf16.msra.mxu1 %v6224_v56  ;;  %2492 = vmatprep.subr.bf16.mxu0 %v6235_v60  ;;  %v6284_v56 = vld [vmem:[%s8739_s3] ss:$12 sps:$4 sm:$0xff]  }
 0x12b   : > { %2467 = vmatprep.subr.bf16.mxu1 %v6232_v59  ;;  %v6292_v59 = vld [vmem:[%s8739_s3 + $0x16c] ss:$12 sps:$4 sm:$0xff]  }
 0x12c   : > { %v6295_v60 = vld [vmem:[%s8739_s3 + $0x2ec] ss:$12 sps:$4 sm:$0xff]  }
 0x12d   : > { %2493 = vmatpush1.bf16.msra.mxu0 %v6233_v63  ;;  %v6298_v63 = vld [vmem:[%s8739_s3 + $0x154] ss:$12 sps:$4 sm:$0xff]  }
 0x12e   : > { %2468 = vmatpush2.bf16.msra.mxu1 %v6230_v62  ;;  %2494 = vmatprep.subr.bf16.mxu0 %v6241_v0  ;;  %v6293_v62 = vld [vmem:[%s8739_s3 + $0x2e8] ss:$12 sps:$4 sm:$0xff]  }
 0x12f   : > { %2469 = vmatprep.subr.bf16.mxu1 %v6238_v52  ;;  %v6296_v52 = vld [vmem:[%s8739_s3 + $0x150] ss:$12 sps:$4 sm:$0xff]   ;;  %v6301_v0 = vld [vmem:[%s8739_s3 + $0x2d4] ss:$12 sps:$4 sm:$0xff]  }
 0x131   : > { %2495 = vmatpush1.bf16.msra.mxu0 %v6239_v4 }
 0x132   : > { %2470 = vmatpush2.bf16.msra.mxu1 %v6236_v3  ;;  %4482 = vmatprep.subr.bf16.mxu0 %v6244_v5  ;;  %v6299_v3 = vld [vmem:[%s8739_s3 + $0x2d0] ss:$12 sps:$4 sm:$0xff]  }
 0x133   : > { %4523 = vmatprep.subr.bf16.mxu1 %v6247_v57  ;;  %v6304_v5 = vld [vmem:[%s8739_s3 + $0x13c] ss:$12 sps:$4 sm:$0xff]   ;;  %v6302_v57 = vld [vmem:[%s8739_s3 + $0x138] ss:$12 sps:$4 sm:$0xff]  }
 0x134   : > { %v7728_v17 = vpop.f32.mrf.mxu0  ;;  %2513 = vmatmul.mubr.bf16.vlgmr.msra.gmra.mxu0 %v7395_v35  ;;  %v6259_v35 = vld [vmem:[%s8739_s3 + $0x1fc] ss:$12 sps:$4 sm:$0xff]  }
 0x135   : > { %v7726_v16 = vpop.f32.mrf.mxu1  ;;  %2472 = vmatmul.mubr.bf16.vlgmr.msra.gmra.mxu1 %v6985_v7  ;;  %4483 = vmatpush1.bf16.msra.mxu0 %v6242_v8  ;;  %v6254_v7 = vld [vmem:[%s8739_s3 + $0x78] ss:$12 sps:$4 sm:$0xff]  }
 0x136   : > { %4514 = vmatprep.mubr.bf16.mxu0 %v7715_v12  ;;  %4524 = vmatpush1.bf16.msra.mxu1 %v6245_v10  ;;  %v2188_v24 = vpop.f32.mrf.mxu0  ;;  %v6305_v10 = vld [vmem:[%s8739_s3 + $0x2b8] ss:$12 sps:$4 sm:$0xff]  }
 0x137   : > { %v2147_v21 = vpop.f32.mrf.mxu1  ;;  %4484 = vmatprep.subr.bf16.mxu0 %v6250_v11  ;;  %4525 = vmatprep.subr.bf16.mxu1 %v6253_v15  ;;  %v6313_v15 = vld [vmem:[%s8739_s3 + $0x2a4] ss:$12 sps:$4 sm:$0xff]  }
 0x138   : > { %v2148_v25 = vadd.f32 %v2147_v21, %v533_v13  ;;  %v2190_v27 = vpop.f32.mrf.mxu0  ;;  %v6310_v13 = vld [vmem:[%s8739_s3 + $0x124] ss:$12 sps:$4 sm:$0xff]   ;;  %v6314_v21 = vld [vmem:[%s8739_s3 + $0x108] ss:$12 sps:$4 sm:$0xff]  }
 0x139   : > { %v2149_v26 = vpop.f32.mrf.mxu1  ;;  %4485 = vmatpush1.bf16.msra.mxu0 %v6248_v14  ;;  %v6308_v14 = vld [vmem:[%s8739_s3 + $0x120] ss:$12 sps:$4 sm:$0xff]  }
 0x13a   : > { %v2189_v29 = vadd.f32 %v2188_v24, %v2148_v25  ;;  %4526 = vmatpush1.bf16.msra.mxu1 %v6251_v19  ;;  %v2191_v31 = vpop.f32.mrf.mxu0  ;;  %4486 = vmatprep.subr.bf16.mxu0 %v6256_v20  ;;  %v6311_v19 = vld [vmem:[%s8739_s3 + $0x2a0] ss:$12 sps:$4 sm:$0xff]   ;;  %v6317_v25 = vld [vmem:[%s8739_s3 + $0x288] ss:$12 sps:$4 sm:$0xff]   ;;  %v529_v26 = vrot.slane %v7585_v22, %v7782_v46 }
 0x13b   : > { %v2150_v30 = vpop.f32.mrf.mxu1  ;;  %4527 = vmatprep.subr.bf16.mxu1 %v6259_v35  ;;  %v6316_v20 = vld [vmem:[%s8739_s3 + $0x10c] ss:$12 sps:$4 sm:$0xff]   ;;  %v540_v35 = vsub.s32 5, %v7571_v18  ;;  %v6325_v27 = vld [vmem:[%s8739_s3 + $0x274] ss:$12 sps:$4 sm:$0xff]  }
 0x13c   : > { %v2524_v34 = vmax.f32 %v2189_v29, 0.0  ;;  %v6319_v24 = vld [vmem:[%s8739_s3 + $0x28c] ss:$12 sps:$4 sm:$0xff]   ;;  %v6323_v29 = vld [vmem:[%s8739_s3 + $0x270] ss:$12 sps:$4 sm:$0xff]   ;;  %v2146_v31 = vadd.f32 %v7726_v16, %v529_v26 }
 0x13d   : > { %4487 = vmatpush1.bf16.msra.mxu0 %v6254_v7  ;;  %v6322_v7 = vld [vmem:[%s8739_s3 + $0xf4] ss:$12 sps:$4 sm:$0xff]   ;;  %v6328_v30 = vld [vmem:[%s8739_s3 + $0xdc] ss:$12 sps:$4 sm:$0xff]   ;;  %v6334_v16 = vld [vmem:[%s8739_s3 + $0xc4] ss:$12 sps:$4 sm:$0xff]  }
 0x13e   : > { %v7754_v36 = vpack.c.bf16 %v2524_v34, %v2524_v34  ;;  %4528 = vmatpush1.bf16.msra.mxu1 %v6257_v28  ;;  %4488 = vmatprep.subr.bf16.mxu0 %v6262_v32  ;;  %v6320_v28 = vld [vmem:[%s8739_s3 + $0xf0] ss:$12 sps:$4 sm:$0xff]   ;;  %v6329_v34 = vld [vmem:[%s8739_s3 + $0x258] ss:$12 sps:$4 sm:$0xff]  }
 0x13f   : > { %4529 = vmatprep.subr.bf16.mxu1 %v6265_v33  ;;  %v6331_v32 = vld [vmem:[%s8739_s3 + $0x25c] ss:$12 sps:$4 sm:$0xff]   ;;  %v6326_v33 = vld [vmem:[%s8739_s3 + $0xd8] ss:$12 sps:$4 sm:$0xff]  }
 0x140   : > { %4555 = vmatprep.mubr.bf16.mxu1 %v7754_v36  ;;  %v6385_v26 = vld [vmem:[%s8739_s3 + $0x484] ss:$12 sps:$4 sm:$0xff]  }
 0x141   : > { %4489 = vmatpush1.bf16.msra.mxu0 %v6260_v37  ;;  %v2187_v37 = vadd.f32 %v7728_v17, %v2146_v31  ;;  %v6340_v17 = vld [vmem:[%s8739_s3 + $0x3ac] ss:$12 sps:$4 sm:$0xff]   ;;  %v548_v31 = vsub.s32 7, %v7571_v18 }
 0x142   : > { %4530 = vmatpush1.bf16.msra.mxu1 %v6263_v38  ;;  %4490 = vmatprep.subr.bf16.mxu0 %v6268_v40  ;;  %v6337_v38 = vld [vmem:[%s8739_s3 + $0x244] ss:$12 sps:$4 sm:$0xff]   ;;  %v6332_v40 = vld [vmem:[%s8739_s3 + $0xc0] ss:$12 sps:$4 sm:$0xff]  }
 0x143   : > { %4531 = vmatprep.subr.bf16.mxu1 %v6271_v41  ;;  %v6335_v41 = vld [vmem:[%s8739_s3 + $0x240] ss:$12 sps:$4 sm:$0xff]  }
 0x145   : > { %4491 = vmatpush1.bf16.msra.mxu0 %v6266_v42  ;;  %v6343_v42 = vld [vmem:[%s8739_s3 + $0x52c] ss:$12 sps:$4 sm:$0xff]  }
 0x146   : > { %4532 = vmatpush1.bf16.msra.mxu1 %v6269_v43  ;;  %4492 = vmatprep.subr.bf16.mxu0 %v6274_v44  ;;  %v2521_v43 = vmax.f32 %v7624_v39, 0.0  ;;  %v2523_v44 = vmax.f32 %v2187_v37, 0.0 }
 0x147   : > { %4533 = vmatprep.subr.bf16.mxu1 %v6277_v45  ;;  %v6338_v45 = vld [vmem:[%s8739_s3 + $0x3a8] ss:$12 sps:$4 sm:$0xff]  }
 0x148   : > { %v7937_v39 = vpack.c.bf16 %v2523_v44, %v2523_v44  ;;  %v6395_v44 = vld [vmem:[%s8739_s3 + $0x5d0] ss:$12 sps:$4 sm:$0xff]  }
 0x149   : > { %4493 = vmatpush1.bf16.msra.mxu0 %v6272_v2  ;;  %v6341_v2 = vld [vmem:[%s8739_s3 + $0x528] ss:$12 sps:$4 sm:$0xff]  }
 0x14a   : > { %4534 = vmatpush1.bf16.msra.mxu1 %v6275_v47  ;;  %4494 = vmatprep.subr.bf16.mxu0 %v6280_v48  ;;  %v6346_v47 = vld [vmem:[%s8739_s3 + $0x394] ss:$12 sps:$4 sm:$0xff]   ;;  %v7935_v48 = vpack.c.bf16 %v2521_v43, %v2521_v43 }
 0x14b   : > { %4535 = vmatprep.subr.bf16.mxu1 %v6283_v50  ;;  %v541_v50 = vrot.slane %v7585_v22, %v540_v35  ;;  %v6382_v35 = vld [vmem:[%s8739_s3 + $0x304] ss:$12 sps:$4 sm:$0xff]  }
 0x14d   : > { %4495 = vmatpush1.bf16.msra.mxu0 %v6278_v51  ;;  %v6344_v51 = vld [vmem:[%s8739_s3 + $0x390] ss:$12 sps:$4 sm:$0xff]  }
 0x14e   : > { %4536 = vmatpush1.bf16.msra.mxu1 %v6281_v53  ;;  %4496 = vmatprep.subr.bf16.mxu0 %v6286_v54  ;;  %v6349_v53 = vld [vmem:[%s8739_s3 + $0x514] ss:$12 sps:$4 sm:$0xff]  }
 0x14f   : > { %4537 = vmatprep.subr.bf16.mxu1 %v6289_v55  ;;  %v6347_v55 = vld [vmem:[%s8739_s3 + $0x510] ss:$12 sps:$4 sm:$0xff]  }
 0x151   : > { %4497 = vmatpush1.bf16.msra.mxu0 %v6284_v56  ;;  %v6352_v56 = vld [vmem:[%s8739_s3 + $0x37c] ss:$12 sps:$4 sm:$0xff]  }
 0x152   : > { %4538 = vmatpush1.bf16.msra.mxu1 %v6287_v58  ;;  %4498 = vmatprep.subr.bf16.mxu0 %v6292_v59  ;;  %v6355_v59 = vld [vmem:[%s8739_s3 + $0x4fc] ss:$12 sps:$4 sm:$0xff]  }
 0x153   : > { %4539 = vmatprep.subr.bf16.mxu1 %v6295_v60 }
 0x155   : > { %v7835_v1 = vpop.f32.mrf.mxu1  ;;  %4499 = vmatpush2.bf16.msra.mxu0 %v6290_v61  ;;  %v6350_v61 = vld [vmem:[%s8739_s3 + $0x378] ss:$12 sps:$4 sm:$0xff]  }
 0x156   : > { %4540 = vmatpush2.bf16.msra.mxu1 %v6293_v62  ;;  %4500 = vmatprep.subr.bf16.mxu0 %v6298_v63  ;;  %v6353_v63 = vld [vmem:[%s8739_s3 + $0x4f8] ss:$12 sps:$4 sm:$0xff]  }
 0x157   : > { %v7840_v4 = vpop.f32.mrf.mxu1  ;;  %4541 = vmatprep.subr.bf16.mxu1 %v6301_v0  ;;  %v6358_v0 = vld [vmem:[%s8739_s3 + $0x364] ss:$12 sps:$4 sm:$0xff]  }
 0x159   : > { %v2272_v8 = vpop.f32.mrf.mxu1  ;;  %4501 = vmatpush2.bf16.msra.mxu0 %v6296_v52 }
 0x15a   : > { %4542 = vmatpush2.bf16.msra.mxu1 %v6299_v3  ;;  %4502 = vmatprep.subr.bf16.mxu0 %v6304_v5  ;;  %v6356_v5 = vld [vmem:[%s8739_s3 + $0x360] ss:$12 sps:$4 sm:$0xff]  }
 0x15b   : > { %v2273_v11 = vpop.f32.mrf.mxu1  ;;  %4543 = vmatprep.subr.bf16.mxu1 %v6307_v6  ;;  %v6364_v8 = vld [vmem:[%s8739_s3 + $0x34c] ss:$12 sps:$4 sm:$0xff]  }
 0x15c   : > { %v6362_v11 = vld [vmem:[%s8739_s3 + $0x348] ss:$12 sps:$4 sm:$0xff]  }
 0x15d   : > { %4503 = vmatpush2.bf16.msra.mxu0 %v6302_v57  ;;  %v6359_v57 = vld [vmem:[%s8739_s3 + $0x4e0] ss:$12 sps:$4 sm:$0xff]  }
 0x15e   : > { %4544 = vmatpush2.bf16.msra.mxu1 %v6305_v10  ;;  %4504 = vmatprep.subr.bf16.mxu0 %v6310_v13  ;;  %v6367_v10 = vld [vmem:[%s8739_s3 + $0x4cc] ss:$12 sps:$4 sm:$0xff]   ;;  %v6365_v13 = vld [vmem:[%s8739_s3 + $0x4c8] ss:$12 sps:$4 sm:$0xff]  }
 0x15f   : > { %4545 = vmatprep.subr.bf16.mxu1 %v6313_v15  ;;  %v6373_v15 = vld [vmem:[%s8739_s3 + $0x4b4] ss:$12 sps:$4 sm:$0xff]  }
 0x161   : > { %4505 = vmatpush2.bf16.msra.mxu0 %v6308_v14  ;;  %v6370_v14 = vld [vmem:[%s8739_s3 + $0x334] ss:$12 sps:$4 sm:$0xff]  }
 0x162   : > { %4546 = vmatpush2.bf16.msra.mxu1 %v6311_v19  ;;  %4506 = vmatprep.subr.bf16.mxu0 %v6316_v20  ;;  %v6368_v19 = vld [vmem:[%s8739_s3 + $0x330] ss:$12 sps:$4 sm:$0xff]  }
 0x163   : > { %4547 = vmatprep.subr.bf16.mxu1 %v6319_v24  ;;  %v6371_v20 = vld [vmem:[%s8739_s3 + $0x4b0] ss:$12 sps:$4 sm:$0xff]  }
 0x164   : > { %v6379_v24 = vld [vmem:[%s8739_s3 + $0x49c] ss:$12 sps:$4 sm:$0xff]  }
 0x165   : > { %4507 = vmatpush2.bf16.msra.mxu0 %v6314_v21  ;;  %v6376_v21 = vld [vmem:[%s8739_s3 + $0x31c] ss:$12 sps:$4 sm:$0xff]  }
 0x166   : > { %4548 = vmatpush2.bf16.msra.mxu1 %v6317_v25  ;;  %4508 = vmatprep.subr.bf16.mxu0 %v6322_v7  ;;  %v6374_v25 = vld [vmem:[%s8739_s3 + $0x318] ss:$12 sps:$4 sm:$0xff]  }
 0x167   : > { %4549 = vmatprep.subr.bf16.mxu1 %v6325_v27  ;;  %v6377_v7 = vld [vmem:[%s8739_s3 + $0x498] ss:$12 sps:$4 sm:$0xff]   ;;  %v6380_v27 = vld [vmem:[%s8739_s3 + $0x300] ss:$12 sps:$4 sm:$0xff]  }
 0x169   : > { %4509 = vmatpush2.bf16.msra.mxu0 %v6320_v28  ;;  %v6383_v28 = vld [vmem:[%s8739_s3 + $0x480] ss:$12 sps:$4 sm:$0xff]  }
 0x16a   : > { %4550 = vmatpush2.bf16.msra.mxu1 %v6323_v29  ;;  %4510 = vmatprep.subr.bf16.mxu0 %v6328_v30  ;;  %v6388_v29 = vld [vmem:[%s8739_s3 + $0x46c] ss:$12 sps:$4 sm:$0xff]  }
 0x16b   : > { %4551 = vmatprep.subr.bf16.mxu1 %v6331_v32  ;;  %v6391_v30 = vld [vmem:[%s8739_s3 + $0x5ec] ss:$12 sps:$4 sm:$0xff]   ;;  %v6386_v32 = vld [vmem:[%s8739_s3 + $0x468] ss:$12 sps:$4 sm:$0xff]  }
 0x16d   : > { %4511 = vmatpush2.bf16.msra.mxu0 %v6326_v33  ;;  %v6389_v33 = vld [vmem:[%s8739_s3 + $0x5e8] ss:$12 sps:$4 sm:$0xff]  }
 0x16e   : > { %4552 = vmatpush2.bf16.msra.mxu1 %v6329_v34  ;;  %4512 = vmatprep.subr.bf16.mxu0 %v6334_v16  ;;  %v6394_v34 = vld [vmem:[%s8739_s3 + $0x454] ss:$12 sps:$4 sm:$0xff]  }
 0x16f   : > { %4553 = vmatprep.subr.bf16.mxu1 %v6337_v38  ;;  %v6627_v16 = vld [vmem:[%s8738_s2] sm:$0xff] }
 0x170   : > { %v549_v37 = vrot.slane %v6627_v16, %v548_v31  ;;  %v6397_v38 = vld [vmem:[%s8739_s3 + $0x5d4] ss:$12 sps:$4 sm:$0xff]   ;;  %v6436_v31 = vld [vmem:[%s8739_s3 + $0x6ac] ss:$12 sps:$4 sm:$0xff]  }
 0x171   : > { %4513 = vmatpush2.bf16.msra.mxu0 %v6332_v40 }
 0x172   : > { %4554 = vmatpush2.bf16.msra.mxu1 %v6335_v41  ;;  %4564 = vmatprep.subr.bf16.mxu0 %v6340_v17  ;;  %v6392_v17 = vld [vmem:[%s8739_s3 + $0x450] ss:$12 sps:$4 sm:$0xff]  }
 0x173   : > { %4605 = vmatprep.subr.bf16.mxu1 %v6343_v42 }
 0x174   : > { %v7946_v54 = vpop.f32.mrf.mxu0  ;;  %4515 = vmatmul.mubr.bf16.vlgmr.msra.gmra.mxu0 %v7935_v48 }
 0x175   : > { %4556 = vmatmul.mubr.bf16.vlgmr.msra.gmra.mxu1 %v7937_v39  ;;  %4565 = vmatpush1.bf16.msra.mxu0 %v6338_v45  ;;  %v6400_v45 = vld [vmem:[%s8739_s3 + $0x43c] ss:$12 sps:$4 sm:$0xff]  }
 0x176   : > { %4606 = vmatpush1.bf16.msra.mxu1 %v6341_v2  ;;  %v2229_v22 = vpop.f32.mrf.mxu0  ;;  %4566 = vmatprep.subr.bf16.mxu0 %v6346_v47  ;;  %v6403_v47 = vld [vmem:[%s8739_s3 + $0x5bc] ss:$12 sps:$4 sm:$0xff]  }
 0x177   : > { %v2230_v58 = vadd.f32 %v2229_v22, %v541_v50  ;;  %4607 = vmatprep.subr.bf16.mxu1 %v6349_v53  ;;  %v6401_v22 = vld [vmem:[%s8739_s3 + $0x5b8] ss:$12 sps:$4 sm:$0xff]  }
 0x178   : > { %v2231_v60 = vpop.f32.mrf.mxu0 }
 0x179   : > { %v2271_v62 = vadd.f32 %v7840_v4, %v2230_v58  ;;  %4567 = vmatpush1.bf16.msra.mxu0 %v6344_v51  ;;  %v6361_v4 = vld [vmem:[%s8739_s3 + $0x4e4] ss:$12 sps:$4 sm:$0xff]   ;;  %v536_v60 = vsub.s32 4, %v7571_v18 }
 0x17a   : > { %4608 = vmatpush1.bf16.msra.mxu1 %v6347_v55  ;;  %v2232_v52 = vpop.f32.mrf.mxu0  ;;  %4568 = vmatprep.subr.bf16.mxu0 %v6352_v56  ;;  %v6398_v55 = vld [vmem:[%s8739_s3 + $0x438] ss:$12 sps:$4 sm:$0xff]  }
 0x17b   : > { %v2526_v3 = vmax.f32 %v2271_v62, 0.0  ;;  %4609 = vmatprep.subr.bf16.mxu1 %v6355_v59  ;;  %v6406_v59 = vld [vmem:[%s8739_s3 + $0x424] ss:$12 sps:$4 sm:$0xff]   ;;  %v6404_v62 = vld [vmem:[%s8739_s3 + $0x420] ss:$12 sps:$4 sm:$0xff]  }
 0x17c   : > { %v6407_v52 = vld [vmem:[%s8739_s3 + $0x5a0] ss:$12 sps:$4 sm:$0xff]  }
 0x17d   : > { %v7978_v6 = vpack.c.bf16 %v2526_v3, %v2526_v3  ;;  %4569 = vmatpush1.bf16.msra.mxu0 %v6350_v61  ;;  %v6412_v3 = vld [vmem:[%s8739_s3 + $0x40c] ss:$12 sps:$4 sm:$0xff]  }
 0x17e   : > { %4610 = vmatpush1.bf16.msra.mxu1 %v6353_v63  ;;  %4570 = vmatprep.subr.bf16.mxu0 %v6358_v0  ;;  %v6409_v63 = vld [vmem:[%s8739_s3 + $0x5a4] ss:$12 sps:$4 sm:$0xff]  }
 0x17f   : > { %4596 = vmatprep.mubr.bf16.mxu0 %v7978_v6  ;;  %4611 = vmatprep.subr.bf16.mxu1 %v6361_v4  ;;  %v6415_v4 = vld [vmem:[%s8739_s3 + $0x58c] ss:$12 sps:$4 sm:$0xff]  }
 0x181   : > { %4571 = vmatpush1.bf16.msra.mxu0 %v6356_v5  ;;  %v544_v5 = vsub.s32 6, %v7571_v18  ;;  %v6534_v18 = vld [vmem:[%s8739_s3 + $0x140] ss:$12 sps:$4 sm:$0xff]  }
 0x182   : > { %4612 = vmatpush1.bf16.msra.mxu1 %v6359_v57  ;;  %4572 = vmatprep.subr.bf16.mxu0 %v6364_v8  ;;  %v6410_v57 = vld [vmem:[%s8739_s3 + $0x408] ss:$12 sps:$4 sm:$0xff]   ;;  %v537_v8 = vrot.slane %v6627_v16, %v536_v60  ;;  %v6469_v60 = vld [vmem:[%s8739_s3 + $0x7cc] ss:$12 sps:$4 sm:$0xff]  }
 0x183   : > { %4613 = vmatprep.subr.bf16.mxu1 %v6367_v10  ;;  %v6413_v10 = vld [vmem:[%s8739_s3 + $0x588] ss:$12 sps:$4 sm:$0xff]  }
 0x185   : > { %4573 = vmatpush1.bf16.msra.mxu0 %v6362_v11  ;;  %v6418_v11 = vld [vmem:[%s8739_s3 + $0x3f4] ss:$12 sps:$4 sm:$0xff]  }
 0x186   : > { %4614 = vmatpush1.bf16.msra.mxu1 %v6365_v13  ;;  %4574 = vmatprep.subr.bf16.mxu0 %v6370_v14  ;;  %v545_v13 = vrot.slane %v6627_v16, %v544_v5  ;;  %v6421_v14 = vld [vmem:[%s8739_s3 + $0x574] ss:$12 sps:$4 sm:$0xff]   ;;  %v6466_v5 = vld [vmem:[%s8739_s3 + $0x61c] ss:$12 sps:$4 sm:$0xff]  }
 0x187   : > { %4615 = vmatprep.subr.bf16.mxu1 %v6373_v15  ;;  %v6416_v15 = vld [vmem:[%s8739_s3 + $0x3f0] ss:$12 sps:$4 sm:$0xff]  }
 0x189   : > { %4575 = vmatpush1.bf16.msra.mxu0 %v6368_v19  ;;  %v2228_v19 = vadd.f32 %v7946_v54, %v537_v8  ;;  %v6422_v54 = vld [vmem:[%s8739_s3 + $0x3d8] ss:$12 sps:$4 sm:$0xff]  }
 0x18a   : > { %4616 = vmatpush1.bf16.msra.mxu1 %v6371_v20  ;;  %4576 = vmatprep.subr.bf16.mxu0 %v6376_v21  ;;  %v6419_v20 = vld [vmem:[%s8739_s3 + $0x570] ss:$12 sps:$4 sm:$0xff]   ;;  %v6464_v8 = vld [vmem:[%s8739_s3 + $0x618] ss:$12 sps:$4 sm:$0xff]  }
 0x18b   : > { %4617 = vmatprep.subr.bf16.mxu1 %v6379_v24  ;;  %v6424_v21 = vld [vmem:[%s8739_s3 + $0x3dc] ss:$12 sps:$4 sm:$0xff]  }
 0x18d   : > { %4577 = vmatpush1.bf16.msra.mxu0 %v6374_v25  ;;  %v6427_v25 = vld [vmem:[%s8739_s3 + $0x55c] ss:$12 sps:$4 sm:$0xff]  }
 0x18e   : > { %4618 = vmatpush1.bf16.msra.mxu1 %v6377_v7  ;;  %4578 = vmatprep.subr.bf16.mxu0 %v6382_v35  ;;  %v2269_v7 = vadd.f32 %v7835_v1, %v2228_v19  ;;  %v6425_v35 = vld [vmem:[%s8739_s3 + $0x558] ss:$12 sps:$4 sm:$0xff]   ;;  %v6428_v1 = vld [vmem:[%s8739_s3 + $0x3c0] ss:$12 sps:$4 sm:$0xff]  }
 0x18f   : > { %4619 = vmatprep.subr.bf16.mxu1 %v6385_v26  ;;  %v6430_v26 = vld [vmem:[%s8739_s3 + $0x3c4] ss:$12 sps:$4 sm:$0xff]   ;;  %v6485_v19 = vld [vmem:[%s8739_s3 + $0x780] ss:$12 sps:$4 sm:$0xff]  }
 0x191   : > { %4579 = vmatpush1.bf16.msra.mxu0 %v6380_v27 }
 0x192   : > { %4620 = vmatpush1.bf16.msra.mxu1 %v6383_v28  ;;  %4580 = vmatprep.subr.bf16.mxu0 %v6388_v29  ;;  %v6433_v28 = vld [vmem:[%s8739_s3 + $0x544] ss:$12 sps:$4 sm:$0xff]   ;;  %v2525_v29 = vmax.f32 %v2269_v7, 0.0 }
 0x193   : > { %4621 = vmatprep.subr.bf16.mxu1 %v6391_v30  ;;  %v6431_v30 = vld [vmem:[%s8739_s3 + $0x540] ss:$12 sps:$4 sm:$0xff]  }
 0x194   : > { %v8051_v41 = vpop.f32.mrf.mxu0  ;;  %v8148_v16 = vpack.c.bf16 %v2525_v29, %v2525_v29  ;;  %v6497_v29 = vld [vmem:[%s8739_s3 + $0x8d0] ss:$12 sps:$4 sm:$0xff]  }
 0x195   : > { %v2309_v40 = vpop.f32.mrf.mxu1  ;;  %4581 = vmatpush2.bf16.msra.mxu0 %v6386_v32 }
 0x196   : > { %4622 = vmatpush2.bf16.msra.mxu1 %v6389_v33  ;;  %v2352_v43 = vpop.f32.mrf.mxu0  ;;  %4582 = vmatprep.subr.bf16.mxu0 %v6394_v34  ;;  %v2310_v24 = vadd.f32 %v2309_v40, %v545_v13  ;;  %v6445_v33 = vld [vmem:[%s8739_s3 + $0x82c] ss:$12 sps:$4 sm:$0xff]   ;;  %v6434_v34 = vld [vmem:[%s8739_s3 + $0x6a8] ss:$12 sps:$4 sm:$0xff]   ;;  %v6487_v13 = vld [vmem:[%s8739_s3 + $0x784] ss:$12 sps:$4 sm:$0xff]  }
 0x197   : > { %v2311_v42 = vpop.f32.mrf.mxu1  ;;  %4623 = vmatprep.subr.bf16.mxu1 %v6397_v38  ;;  %v6443_v38 = vld [vmem:[%s8739_s3 + $0x828] ss:$12 sps:$4 sm:$0xff]  }
 0x198   : > { %v2312_v2 = vadd.f32 %v2311_v42, %v549_v37  ;;  %v2354_v51 = vpop.f32.mrf.mxu0  ;;  %v2351_v27 = vadd.f32 %v8051_v41, %v2310_v24  ;;  %v6439_v37 = vld [vmem:[%s8739_s3 + $0x694] ss:$12 sps:$4 sm:$0xff]   ;;  %v6437_v42 = vld [vmem:[%s8739_s3 + $0x690] ss:$12 sps:$4 sm:$0xff]   ;;  %v8257_v24 = vld [vmem:[%s8738_s2 + $0x8] sm:$0xf] }
 0x199   : > { %v2313_v50 = vpop.f32.mrf.mxu1  ;;  %4583 = vmatpush2.bf16.msra.mxu0 %v6392_v17  ;;  %v6451_v41 = vld [vmem:[%s8739_s3 + $0x814] ss:$12 sps:$4 sm:$0xff]   ;;  %v557_v7 = vrot.slane %v8257_v24, %v7652_v49 }
 0x19a   : > { %v2353_v53 = vadd.f32 %v2352_v43, %v2312_v2  ;;  %4624 = vmatpush2.bf16.msra.mxu1 %v6395_v44  ;;  %v2355_v58 = vpop.f32.mrf.mxu0  ;;  %4584 = vmatprep.subr.bf16.mxu0 %v6400_v45  ;;  %v2527_v32 = vmax.f32 %v2351_v27, 0.0  ;;  %v6442_v44 = vld [vmem:[%s8739_s3 + $0x67c] ss:$12 sps:$4 sm:$0xff]   ;;  %v6440_v50 = vld [vmem:[%s8739_s3 + $0x678] ss:$12 sps:$4 sm:$0xff]  }
 0x19b   : > { %v2314_v56 = vpop.f32.mrf.mxu1  ;;  %4625 = vmatprep.subr.bf16.mxu1 %v6403_v47  ;;  %v6449_v45 = vld [vmem:[%s8739_s3 + $0x810] ss:$12 sps:$4 sm:$0xff]   ;;  %v6454_v58 = vld [vmem:[%s8739_s3 + $0x64c] ss:$12 sps:$4 sm:$0xff]  }
 0x19c   : > { %v2528_v61 = vmax.f32 %v2353_v53, 0.0  ;;  %v8156_v40 = vpack.c.bf16 %v2527_v32, %v2527_v32  ;;  %v6457_v2 = vld [vmem:[%s8739_s3 + $0x7fc] ss:$12 sps:$4 sm:$0xff]   ;;  %v6448_v53 = vld [vmem:[%s8739_s3 + $0x664] ss:$12 sps:$4 sm:$0xff]  }
 0x19d   : > { %4585 = vmatpush2.bf16.msra.mxu0 %v6398_v55  ;;  %v6455_v55 = vld [vmem:[%s8739_s3 + $0x7f8] ss:$12 sps:$4 sm:$0xff]   ;;  %v6446_v56 = vld [vmem:[%s8739_s3 + $0x660] ss:$12 sps:$4 sm:$0xff]   ;;  %v6482_v27 = vld [vmem:[%s8739_s3 + $0x750] ss:$12 sps:$4 sm:$0xff]  }
 0x19e   : > { %v8084_v0 = vpack.c.bf16 %v2528_v61, %v2528_v61  ;;  %4626 = vmatpush2.bf16.msra.mxu1 %v6401_v22  ;;  %4586 = vmatprep.subr.bf16.mxu0 %v6406_v59  ;;  %v6463_v22 = vld [vmem:[%s8739_s3 + $0x7e4] ss:$12 sps:$4 sm:$0xff]   ;;  %v6461_v59 = vld [vmem:[%s8739_s3 + $0x7e0] ss:$12 sps:$4 sm:$0xff]   ;;  %v6452_v61 = vld [vmem:[%s8739_s3 + $0x648] ss:$12 sps:$4 sm:$0xff]  }
 0x19f   : > { %4627 = vmatprep.subr.bf16.mxu1 %v6409_v63  ;;  %v6467_v63 = vld [vmem:[%s8739_s3 + $0x7c8] ss:$12 sps:$4 sm:$0xff]  }
 0x1a0   : > { %4637 = vmatprep.mubr.bf16.mxu1 %v8084_v0 }
 0x1a1   : > { %4587 = vmatpush2.bf16.msra.mxu0 %v6404_v62  ;;  %v6460_v62 = vld [vmem:[%s8739_s3 + $0x634] ss:$12 sps:$4 sm:$0xff]  }
 0x1a2   : > { %4628 = vmatpush2.bf16.msra.mxu1 %v6407_v52  ;;  %4588 = vmatprep.subr.bf16.mxu0 %v6412_v3  ;;  %v6475_v52 = vld [vmem:[%s8739_s3 + $0x7b4] ss:$12 sps:$4 sm:$0xff]   ;;  %v6458_v3 = vld [vmem:[%s8739_s3 + $0x630] ss:$12 sps:$4 sm:$0xff]  }
 0x1a3   : > { %4629 = vmatprep.subr.bf16.mxu1 %v6415_v4  ;;  %v6473_v4 = vld [vmem:[%s8739_s3 + $0x7b0] ss:$12 sps:$4 sm:$0xff]  }
 0x1a5   : > { %4589 = vmatpush2.bf16.msra.mxu0 %v6410_v57  ;;  %v6481_v57 = vld [vmem:[%s8739_s3 + $0x79c] ss:$12 sps:$4 sm:$0xff]  }
 0x1a6   : > { %4630 = vmatpush2.bf16.msra.mxu1 %v6413_v10  ;;  %4590 = vmatprep.subr.bf16.mxu0 %v6418_v11  ;;  %v6472_v10 = vld [vmem:[%s8739_s3 + $0x604] ss:$12 sps:$4 sm:$0xff]  }
 0x1a7   : > { %4631 = vmatprep.subr.bf16.mxu1 %v6421_v14  ;;  %v6479_v11 = vld [vmem:[%s8739_s3 + $0x798] ss:$12 sps:$4 sm:$0xff]   ;;  %v6470_v14 = vld [vmem:[%s8739_s3 + $0x600] ss:$12 sps:$4 sm:$0xff]  }
 0x1a9   : > { %4591 = vmatpush2.bf16.msra.mxu0 %v6416_v15  ;;  %v6478_v15 = vld [vmem:[%s8739_s3 + $0x76c] ss:$12 sps:$4 sm:$0xff]  }
 0x1aa   : > { %4632 = vmatpush2.bf16.msra.mxu1 %v6419_v20  ;;  %4592 = vmatprep.subr.bf16.mxu0 %v6424_v21  ;;  %v6493_v20 = vld [vmem:[%s8739_s3 + $0x8ec] ss:$12 sps:$4 sm:$0xff]   ;;  %v6476_v21 = vld [vmem:[%s8739_s3 + $0x768] ss:$12 sps:$4 sm:$0xff]  }
 0x1ab   : > { %4633 = vmatprep.subr.bf16.mxu1 %v6427_v25  ;;  %v6484_v25 = vld [vmem:[%s8739_s3 + $0x754] ss:$12 sps:$4 sm:$0xff]  }
 0x1ad   : > { %4593 = vmatpush2.bf16.msra.mxu0 %v6422_v54  ;;  %v6491_v54 = vld [vmem:[%s8739_s3 + $0x8e8] ss:$12 sps:$4 sm:$0xff]  }
 0x1ae   : > { %4634 = vmatpush2.bf16.msra.mxu1 %v6425_v35  ;;  %4594 = vmatprep.subr.bf16.mxu0 %v6430_v26  ;;  %v6499_v35 = vld [vmem:[%s8739_s3 + $0x8d4] ss:$12 sps:$4 sm:$0xff]  }
 0x1af   : > { %4635 = vmatprep.subr.bf16.mxu1 %v6433_v28 }
 0x1b1   : > { %4595 = vmatpush2.bf16.msra.mxu0 %v6428_v1  ;;  %v6490_v1 = vld [vmem:[%s8739_s3 + $0x73c] ss:$12 sps:$4 sm:$0xff]  }
 0x1b2   : > { %4636 = vmatpush2.bf16.msra.mxu1 %v6431_v30  ;;  %4646 = vmatprep.subr.bf16.mxu0 %v6436_v31  ;;  %v6505_v31 = vld [vmem:[%s8739_s3 + $0x8bc] ss:$12 sps:$4 sm:$0xff]  }
 0x1b3   : > { %4687 = vmatprep.subr.bf16.mxu1 %v6445_v33 }
 0x1b4   : > { %4597 = vmatmul.mubr.bf16.vlgmr.msra.gmra.mxu0 %v8148_v16 }
 0x1b5   : > { %v8161_v17 = vpop.f32.mrf.mxu1  ;;  %4638 = vmatmul.mubr.bf16.vlgmr.msra.gmra.mxu1 %v8156_v40  ;;  %4647 = vmatpush1.bf16.msra.mxu0 %v6434_v34  ;;  %v6488_v34 = vld [vmem:[%s8739_s3 + $0x738] ss:$12 sps:$4 sm:$0xff]  }
 0x1b6   : > { %4648 = vmatprep.subr.bf16.mxu0 %v6439_v37  ;;  %4688 = vmatpush1.bf16.msra.mxu1 %v6443_v38  ;;  %v6496_v38 = vld [vmem:[%s8739_s3 + $0x724] ss:$12 sps:$4 sm:$0xff]  }
 0x1b7   : > { %v8168_v43 = vpop.f32.mrf.mxu1  ;;  %4689 = vmatprep.subr.bf16.mxu1 %v6451_v41  ;;  %v6503_v41 = vld [vmem:[%s8739_s3 + $0x8b8] ss:$12 sps:$4 sm:$0xff]  }
 0x1b9   : > { %v2436_v47 = vpop.f32.mrf.mxu1  ;;  %4649 = vmatpush1.bf16.msra.mxu0 %v6437_v42 }
 0x1ba   : > { %4650 = vmatprep.subr.bf16.mxu0 %v6442_v44  ;;  %4690 = vmatpush1.bf16.msra.mxu1 %v6449_v45  ;;  %v6494_v45 = vld [vmem:[%s8739_s3 + $0x720] ss:$12 sps:$4 sm:$0xff]  }
 0x1bb   : > { %v2437_v51 = vpop.f32.mrf.mxu1  ;;  %4691 = vmatprep.subr.bf16.mxu1 %v6457_v2  ;;  %v6502_v2 = vld [vmem:[%s8739_s3 + $0x70c] ss:$12 sps:$4 sm:$0xff]  }
 0x1bc   : > { %v6509_v47 = vld [vmem:[%s8739_s3 + $0x8a0] ss:$12 sps:$4 sm:$0xff]   ;;  %v6500_v51 = vld [vmem:[%s8739_s3 + $0x708] ss:$12 sps:$4 sm:$0xff]  }
 0x1bd   : > { %4651 = vmatpush1.bf16.msra.mxu0 %v6440_v50  ;;  %v6517_v50 = vld [vmem:[%s8739_s3 + $0x88c] ss:$12 sps:$4 sm:$0xff]  }
 0x1be   : > { %4652 = vmatprep.subr.bf16.mxu0 %v6448_v53  ;;  %4692 = vmatpush1.bf16.msra.mxu1 %v6455_v55  ;;  %v553_v53 = vrot.slane %v8257_v24, %v7588_v23  ;;  %v6508_v55 = vld [vmem:[%s8739_s3 + $0x6f4] ss:$12 sps:$4 sm:$0xff]  }
 0x1bf   : > { %4693 = vmatprep.subr.bf16.mxu1 %v6463_v22  ;;  %v6515_v22 = vld [vmem:[%s8739_s3 + $0x888] ss:$12 sps:$4 sm:$0xff]  }
 0x1c1   : > { %4653 = vmatpush1.bf16.msra.mxu0 %v6446_v56  ;;  %v6523_v56 = vld [vmem:[%s8739_s3 + $0x874] ss:$12 sps:$4 sm:$0xff]  }
 0x1c2   : > { %4654 = vmatprep.subr.bf16.mxu0 %v6454_v58  ;;  %4694 = vmatpush1.bf16.msra.mxu1 %v6461_v59  ;;  %v6506_v58 = vld [vmem:[%s8739_s3 + $0x6f0] ss:$12 sps:$4 sm:$0xff]  }
 0x1c3   : > { %4695 = vmatprep.subr.bf16.mxu1 %v6469_v60  ;;  %v6514_v60 = vld [vmem:[%s8739_s3 + $0x6dc] ss:$12 sps:$4 sm:$0xff]  }
 0x1c5   : > { %4655 = vmatpush1.bf16.msra.mxu0 %v6452_v61  ;;  %v6521_v61 = vld [vmem:[%s8739_s3 + $0x870] ss:$12 sps:$4 sm:$0xff]  }
 0x1c6   : > { %4656 = vmatprep.subr.bf16.mxu0 %v6460_v62  ;;  %4696 = vmatpush1.bf16.msra.mxu1 %v6467_v63  ;;  %v6528_v62 = vld [vmem:[%s8739_s3 + $0x85c] ss:$12 sps:$4 sm:$0xff]   ;;  %v6512_v63 = vld [vmem:[%s8739_s3 + $0x6d8] ss:$12 sps:$4 sm:$0xff]  }
 0x1c7   : > { %4697 = vmatprep.subr.bf16.mxu1 %v6475_v52 }
 0x1c9   : > { %4657 = vmatpush1.bf16.msra.mxu0 %v6458_v3  ;;  %v6520_v3 = vld [vmem:[%s8739_s3 + $0x6c4] ss:$12 sps:$4 sm:$0xff]  }
 0x1ca   : > { %4658 = vmatprep.subr.bf16.mxu0 %v6466_v5  ;;  %4698 = vmatpush1.bf16.msra.mxu1 %v6473_v4  ;;  %v6526_v5 = vld [vmem:[%s8739_s3 + $0x858] ss:$12 sps:$4 sm:$0xff]  }
 0x1cb   : > { %4699 = vmatprep.subr.bf16.mxu1 %v6481_v57  ;;  %v6533_v4 = vld [vmem:[%s8739_s3 + $0x844] ss:$12 sps:$4 sm:$0xff]  }
 0x1cd   : > { %4659 = vmatpush1.bf16.msra.mxu0 %v6464_v8  ;;  %v6524_v8 = vld [vmem:[%s8739_s3 + $0x170] ss:$12 sps:$4 sm:$0xff]  }
 0x1ce   : > { %4660 = vmatprep.subr.bf16.mxu0 %v6472_v10  ;;  %4700 = vmatpush1.bf16.msra.mxu1 %v6479_v11  ;;  %v6531_v10 = vld [vmem:[%s8739_s3 + $0x840] ss:$12 sps:$4 sm:$0xff]   ;;  %v6536_v11 = vld [vmem:[%s8739_s3 + $0x2f0] ss:$12 sps:$4 sm:$0xff]  }
 0x1cf   : > { %4701 = vmatprep.subr.bf16.mxu1 %v6487_v13  ;;  %v561_v13 = vrot.slane %v8257_v24, %v7782_v46 }
 0x1d1   : > { %4661 = vmatpush1.bf16.msra.mxu0 %v6470_v14  ;;  %v6525_v14 = vld [vmem:[%s8739_s3 + $0xb0] ss:$12 sps:$4 sm:$0xff]  }
 0x1d2   : > { %4662 = vmatprep.subr.bf16.mxu0 %v6478_v15  ;;  %4702 = vmatpush1.bf16.msra.mxu1 %v6485_v19  ;;  %v6529_v19 = vld [vmem:[%s8739_s3 + $0x158] ss:$12 sps:$4 sm:$0xff]  }
 0x1d3   : > { %4703 = vmatprep.subr.bf16.mxu1 %v6493_v20  ;;  %v565_v20 = vrot.slane %v8257_v24, %v532_v9 }
 0x1d4   : > { %v2391_v26 = vpop.f32.mrf.mxu0 }
 0x1d5   : > { %4663 = vmatpush2.bf16.msra.mxu0 %v6476_v21  ;;  %v2392_v59 = vadd.f32 %v2391_v26, %v553_v53  ;;  %v6548_v53 = vld [vmem:[%s8739_s3 + $0x2a8] ss:$12 sps:$4 sm:$0xff]  }
 0x1d6   : > { %v2393_v28 = vpop.f32.mrf.mxu0  ;;  %4664 = vmatprep.subr.bf16.mxu0 %v6484_v25  ;;  %4704 = vmatpush2.bf16.msra.mxu1 %v6491_v54 }
 0x1d7   : > { %v2394_v30 = vadd.f32 %v2393_v28, %v557_v7  ;;  %4705 = vmatprep.subr.bf16.mxu1 %v6499_v35  ;;  %v2433_v52 = vadd.f32 %v8161_v17, %v2392_v59  ;;  %v6518_v17 = vld [vmem:[%s8739_s3 + $0x6c0] ss:$12 sps:$4 sm:$0xff]   ;;  %v6530_v7 = vld [vmem:[%s8739_s3 + $0x98] ss:$12 sps:$4 sm:$0xff]   ;;  %v6553_v59 = vld [vmem:[%s8739_s3 + $0xc8] ss:$12 sps:$4 sm:$0xff]  }
 0x1d8   : > { %v2395_v32 = vpop.f32.mrf.mxu0 }
 0x1d9   : > { %v2435_v33 = vadd.f32 %v8168_v43, %v2394_v30  ;;  %4665 = vmatpush2.bf16.msra.mxu0 %v6482_v27  ;;  %v6511_v43 = vld [vmem:[%s8739_s3 + $0x8a4] ss:$12 sps:$4 sm:$0xff]   ;;  %v2529_v57 = vmax.f32 %v2433_v52, 0.0  ;;  %v6537_v32 = vld [vmem:[%s8739_s3 + $0x128] ss:$12 sps:$4 sm:$0xff]  }
 0x1da   : > { %v2396_v37 = vpop.f32.mrf.mxu0  ;;  %4666 = vmatprep.subr.bf16.mxu0 %v6490_v1  ;;  %4706 = vmatpush2.bf16.msra.mxu1 %v6497_v29  ;;  %v6557_v52 = vld [vmem:[%s8739_s3 + $0x1b8] ss:$12 sps:$4 sm:$0xff]  }
 0x1db   : > { %v2530_v42 = vmax.f32 %v2435_v33, 0.0  ;;  %4707 = vmatprep.subr.bf16.mxu1 %v6505_v31  ;;  %v8366_v15 = vpack.c.bf16 %v2529_v57, %v2529_v57  ;;  %v6538_v37 = vld [vmem:[%s8739_s3 + $0x230] ss:$12 sps:$4 sm:$0xff]   ;;  %v6563_v57 = vld [vmem:[%s8739_s3 + $0x398] ss:$12 sps:$4 sm:$0xff]  }
 0x1dd   : > { %v8295_v44 = vpack.c.bf16 %v2530_v42, %v2530_v42  ;;  %4667 = vmatpush2.bf16.msra.mxu0 %v6488_v34  ;;  %v6540_v42 = vld [vmem:[%s8739_s3 + $0x2d8] ss:$12 sps:$4 sm:$0xff]  }
 0x1de   : > { %4668 = vmatprep.subr.bf16.mxu0 %v6496_v38  ;;  %4708 = vmatpush2.bf16.msra.mxu1 %v6503_v41  ;;  %v6539_v38 = vld [vmem:[%s8739_s3 + $0x68] ss:$12 sps:$4 sm:$0xff]  }
 0x1df   : > { %4678 = vmatprep.mubr.bf16.mxu0 %v8295_v44  ;;  %4709 = vmatprep.subr.bf16.mxu1 %v6511_v43  ;;  %v6541_v43 = vld [vmem:[%s8739_s3 + $0x110] ss:$12 sps:$4 sm:$0xff]  }
 0x1e1   : > { %4669 = vmatpush2.bf16.msra.mxu0 %v6494_v45  ;;  %v6542_v45 = vld [vmem:[%s8739_s3 + $0x218] ss:$12 sps:$4 sm:$0xff]  }
 0x1e2   : > { %4670 = vmatprep.subr.bf16.mxu0 %v6502_v2  ;;  %4710 = vmatpush2.bf16.msra.mxu1 %v6509_v47  ;;  %v6543_v2 = vld [vmem:[%s8739_s3 + $0x50] ss:$12 sps:$4 sm:$0xff]   ;;  %v6544_v47 = vld [vmem:[%s8739_s3 + $0x2c0] ss:$12 sps:$4 sm:$0xff]  }
 0x1e3   : > { %4711 = vmatprep.subr.bf16.mxu1 %v6517_v50  ;;  %v6545_v50 = vld [vmem:[%s8739_s3 + $0xf8] ss:$12 sps:$4 sm:$0xff]  }
 0x1e5   : > { %4671 = vmatpush2.bf16.msra.mxu0 %v6500_v51  ;;  %v6546_v51 = vld [vmem:[%s8739_s3 + $0x200] ss:$12 sps:$4 sm:$0xff]  }
 0x1e6   : > { %4672 = vmatprep.subr.bf16.mxu0 %v6508_v55  ;;  %4712 = vmatpush2.bf16.msra.mxu1 %v6515_v22  ;;  %v6549_v55 = vld [vmem:[%s8739_s3 + $0xe0] ss:$12 sps:$4 sm:$0xff]   ;;  %v6550_v22 = vld [vmem:[%s8739_s3 + $0x1e8] ss:$12 sps:$4 sm:$0xff]  }
 0x1e7   : > { %4713 = vmatprep.subr.bf16.mxu1 %v6523_v56  ;;  %v6551_v56 = vld [vmem:[%s8739_s3 + $0x20] ss:$12 sps:$4 sm:$0xff]  }
 0x1e9   : > { %4673 = vmatpush2.bf16.msra.mxu0 %v6506_v58  ;;  %v6552_v58 = vld [vmem:[%s8739_s3 + $0x290] ss:$12 sps:$4 sm:$0xff]  }
 0x1ea   : > { %4674 = vmatprep.subr.bf16.mxu0 %v6514_v60  ;;  %4714 = vmatpush2.bf16.msra.mxu1 %v6521_v61  ;;  %v6554_v60 = vld [vmem:[%s8739_s3 + $0x1d0] ss:$12 sps:$4 sm:$0xff]   ;;  %v6555_v61 = vld [vmem:[%s8739_s3 + $0x8] ss:$12 sps:$4 sm:$0xff]  }
 0x1eb   : > { %4715 = vmatprep.subr.bf16.mxu1 %v6528_v62  ;;  %v6556_v62 = vld [vmem:[%s8739_s3 + $0x278] ss:$12 sps:$4 sm:$0xff]  }
 0x1ed   : > { %4675 = vmatpush2.bf16.msra.mxu0 %v6512_v63  ;;  %v6558_v63 = vld [vmem:[%s8739_s3 + $0x470] ss:$12 sps:$4 sm:$0xff]  }
 0x1ee   : > { %4676 = vmatprep.subr.bf16.mxu0 %v6520_v3  ;;  %4716 = vmatpush2.bf16.msra.mxu1 %v6526_v5  ;;  %v6559_v3 = vld [vmem:[%s8739_s3 + $0x3b0] ss:$12 sps:$4 sm:$0xff]   ;;  %v6560_v5 = vld [vmem:[%s8739_s3 + $0x260] ss:$12 sps:$4 sm:$0xff]  }
 0x1ef   : > { %4717 = vmatprep.subr.bf16.mxu1 %v6533_v4  ;;  %v6562_v4 = vld [vmem:[%s8739_s3 + $0x458] ss:$12 sps:$4 sm:$0xff]  }
 0x1f1   : > { %4677 = vmatpush2.bf16.msra.mxu0 %v6518_v17  ;;  %v6561_v17 = vld [vmem:[%s8739_s3 + $0x1a0] ss:$12 sps:$4 sm:$0xff]  }
 0x1f2   : > { %5632 = vmatprep.subr.bf16.mxu0 %v6524_v8  ;;  %4718 = vmatpush2.bf16.msra.mxu1 %v6531_v10  ;;  %v6564_v8 = vld [vmem:[%s8739_s3 + $0x248] ss:$12 sps:$4 sm:$0xff]  }
 0x1f3   : > { %5654 = vmatprep.subr.bf16.mxu1 %v6536_v11  ;;  %v6565_v10 = vld [vmem:[%s8739_s3 + $0x188] ss:$12 sps:$4 sm:$0xff]   ;;  %v6568_v11 = vld [vmem:[%s8739_s3 + $0x5f0] ss:$12 sps:$4 sm:$0xff]  }
 0x1f4   : > { %v2514_v25 = vpop.f32.mrf.mxu0  ;;  %4679 = vmatmul.mubr.bf16.vlgmr.msra.gmra.mxu0 %v8366_v15 }
 0x1f5   : > { %v2473_v21 = vpop.f32.mrf.mxu1  ;;  %5633 = vmatpush3.bf16.msra.mxu0 %v6525_v14  ;;  %4760 = vmatprep.mubr.bf16.mxu0 %v7715_v12  ;;  %v6535_v12 = vld [vmem:[%s8739_s3 + $0x80] ss:$12 sps:$4 sm:$0xff]   ;;  %v6570_v14 = vld [vmem:[%s8739_s3 + $0x530] ss:$12 sps:$4 sm:$0xff]  }
 0x1f6   : > { %v2474_v54 = vadd.f32 %v2473_v21, %v561_v13  ;;  %v2516_v26 = vpop.f32.mrf.mxu0  ;;  %5634 = vmatprep.subr.bf16.mxu0 %v6529_v19  ;;  %v6569_v13 = vld [vmem:[%s8739_s3 + $0x428] ss:$12 sps:$4 sm:$0xff]   ;;  %v6573_v21 = vld [vmem:[%s8739_s3 + $0x410] ss:$12 sps:$4 sm:$0xff]  }
 0x1f7   : > { %v2475_v35 = vpop.f32.mrf.mxu1  ;;  %v6571_v19 = vld [vmem:[%s8739_s3 + $0x368] ss:$12 sps:$4 sm:$0xff]  }
 0x1f8   : > { %v2515_v9 = vadd.f32 %v2514_v25, %v2474_v54  ;;  %v2476_v24 = vadd.f32 %v2475_v35, %v565_v20  ;;  %v2518_v28 = vpop.f32.mrf.mxu0  ;;  %v6572_v20 = vld [vmem:[%s8739_s3 + $0x5d8] ss:$12 sps:$4 sm:$0xff]   ;;  %v6575_v54 = vld [vmem:[%s8739_s3 + $0x350] ss:$12 sps:$4 sm:$0xff]  }
 0x1f9   : > { %v2477_v27 = vpop.f32.mrf.mxu1  ;;  %5635 = vmatpush3.bf16.msra.mxu0 %v6530_v7  ;;  %v6574_v25 = vld [vmem:[%s8739_s3 + $0x518] ss:$12 sps:$4 sm:$0xff]   ;;  %v6576_v7 = vld [vmem:[%s8739_s3 + $0x5c0] ss:$12 sps:$4 sm:$0xff]   ;;  %v6585_v28 = vld [vmem:[%s8739_s3 + $0x3c8] ss:$12 sps:$4 sm:$0xff]  }
 0x1fa   : > { %v2517_v1 = vadd.f32 %v2516_v26, %v2476_v24  ;;  %v2531_v29 = vmax.f32 %v2515_v9, 0.0  ;;  %v2519_v31 = vpop.f32.mrf.mxu0  ;;  %5636 = vmatprep.subr.bf16.mxu0 %v6534_v18  ;;  %v6579_v35 = vld [vmem:[%s8739_s3 + $0x338] ss:$12 sps:$4 sm:$0xff]   ;;  %v6580_v26 = vld [vmem:[%s8739_s3 + $0x5a8] ss:$12 sps:$4 sm:$0xff]  }
 0x1fb   : > { %v2478_v30 = vpop.f32.mrf.mxu1  ;;  %v6581_v18 = vld [vmem:[%s8739_s3 + $0x3e0] ss:$12 sps:$4 sm:$0xff]   ;;  %v6582_v9 = vld [vmem:[%s8739_s3 + $0x4e8] ss:$12 sps:$4 sm:$0xff]   ;;  %v6584_v27 = vld [vmem:[%s8739_s3 + $0x590] ss:$12 sps:$4 sm:$0xff]  }
 0x1fc   : > { %v2532_v33 = vmax.f32 %v2517_v1, 0.0  ;;  %v8396_v41 = vpack.c.bf16 %v2531_v29, %v2531_v29  ;;  %v6583_v24 = vld [vmem:[%s8739_s3 + $0x320] ss:$12 sps:$4 sm:$0xff]   ;;  %v6586_v1 = vld [vmem:[%s8739_s3 + $0x4d0] ss:$12 sps:$4 sm:$0xff]  }
 0x1fd   : > { %5637 = vmatpush3.bf16.msra.mxu0 %v6535_v12  ;;  %v6587_v12 = vld [vmem:[%s8739_s3 + $0x308] ss:$12 sps:$4 sm:$0xff]   ;;  %v6588_v29 = vld [vmem:[%s8739_s3 + $0x578] ss:$12 sps:$4 sm:$0xff]   ;;  %v8555_v30 = vld [vmem:[%s8740_s4] sm:$0x7] }
 0x1fe   : > { %v8388_v34 = vpack.c.bf16 %v2532_v33, %v2532_v33  ;;  %5638 = vmatprep.subr.bf16.mxu0 %v6537_v32  ;;  %v6590_v31 = vld [vmem:[%s8739_s3 + $0x770] ss:$12 sps:$4 sm:$0xff]   ;;  %v2934_v32 = vrot.slane %v8555_v30, %v7588_v23  ;;  %v6589_v33 = vld [vmem:[%s8739_s3 + $0x4b8] ss:$12 sps:$4 sm:$0xff]  }
 0x1ff   : > { %v6594_v23 = vld [vmem:[%s8739_s3 + $0x758] ss:$12 sps:$4 sm:$0xff]  }
 0x200   : > { %4719 = vmatprep.mubr.bf16.mxu1 %v8388_v34 }
 0x201   : > { %4720 = vmatmul.mubr.bf16.vlgmr.msra.gmra.mxu1 %v8396_v41  ;;  %5639 = vmatpush3.bf16.msra.mxu0 %v6539_v38  ;;  %v2938_v38 = vrot.slane %v8555_v30, %v7652_v49 }
 0x202   : > { %5655 = vmatpush3.bf16.msra.mxu1 %v6538_v37  ;;  %4800 = vmatprep.mubr.bf16.mxu1 %v7754_v36  ;;  %v6547_v36 = vld [vmem:[%s8739_s3 + $0x38] ss:$12 sps:$4 sm:$0xff]   ;;  %v6591_v37 = vld [vmem:[%s8739_s3 + $0x6b0] ss:$12 sps:$4 sm:$0xff]  }
 0x203   : > { %5656 = vmatprep.subr.bf16.mxu1 %v6540_v42  ;;  %5640 = vmatprep.subr.bf16.mxu0 %v6541_v43  ;;  %v6592_v42 = vld [vmem:[%s8739_s3 + $0x560] ss:$12 sps:$4 sm:$0xff]  }
 0x205   : > { %5641 = vmatpush3.bf16.msra.mxu0 %v6543_v2 }
 0x206   : > { %5657 = vmatpush3.bf16.msra.mxu1 %v6542_v45  ;;  %5642 = vmatprep.subr.bf16.mxu0 %v6545_v50  ;;  %v6595_v50 = vld [vmem:[%s8739_s3 + $0x698] ss:$12 sps:$4 sm:$0xff]  }
 0x207   : > { %5658 = vmatprep.subr.bf16.mxu1 %v6544_v47  ;;  %v6593_v47 = vld [vmem:[%s8739_s3 + $0x4a0] ss:$12 sps:$4 sm:$0xff]  }
 0x209   : > { %5643 = vmatpush3.bf16.msra.mxu0 %v6547_v36 }
 0x20a   : > { %5659 = vmatpush3.bf16.msra.mxu1 %v6546_v51  ;;  %5644 = vmatprep.subr.bf16.mxu0 %v6549_v55  ;;  %v6596_v51 = vld [vmem:[%s8739_s3 + $0x548] ss:$12 sps:$4 sm:$0xff]   ;;  %v6598_v55 = vld [vmem:[%s8739_s3 + $0x740] ss:$12 sps:$4 sm:$0xff]  }
 0x20b   : > { %5660 = vmatprep.subr.bf16.mxu1 %v6548_v53 }
 0x20d   : > { %5645 = vmatpush3.bf16.msra.mxu0 %v6551_v56 }
 0x20e   : > { %5661 = vmatpush3.bf16.msra.mxu1 %v6550_v22  ;;  %5646 = vmatprep.subr.bf16.mxu0 %v6553_v59 }
 0x20f   : > { %5662 = vmatprep.subr.bf16.mxu1 %v6552_v58  ;;  %v6597_v58 = vld [vmem:[%s8739_s3 + $0x488] ss:$12 sps:$4 sm:$0xff]  }
 0x211   : > { %5647 = vmatpush3.bf16.msra.mxu0 %v6555_v61  ;;  %v6600_v61 = vld [vmem:[%s8739_s3 + $0x8f0] ss:$12 sps:$4 sm:$0xff]  }
 0x212   : > { %5663 = vmatpush3.bf16.msra.mxu1 %v6554_v60  ;;  %5676 = vmatprep.subr.bf16.mxu0 %v6558_v63  ;;  %v6599_v60 = vld [vmem:[%s8739_s3 + $0x680] ss:$12 sps:$4 sm:$0xff]   ;;  %v6601_v63 = vld [vmem:[%s8739_s3 + $0x728] ss:$12 sps:$4 sm:$0xff]  }
 0x213   : > { %5664 = vmatprep.subr.bf16.mxu1 %v6556_v62 }
 0x214   : > { %4761 = vmatmul.mubr.bf16.vlgmr.msra.gmra.mxu0 %v7935_v48  ;;  %v6566_v48 = vld [vmem:[%s8739_s3 + $0x440] ss:$12 sps:$4 sm:$0xff]  }
 0x215   : > { %5677 = vmatpush3.bf16.msra.mxu0 %v6559_v3  ;;  %4840 = vmatprep.mubr.bf16.mxu0 %v7978_v6  ;;  %v6567_v6 = vld [vmem:[%s8739_s3 + $0x380] ss:$12 sps:$4 sm:$0xff]   ;;  %v6603_v3 = vld [vmem:[%s8739_s3 + $0x668] ss:$12 sps:$4 sm:$0xff]  }
 0x216   : > { %5665 = vmatpush3.bf16.msra.mxu1 %v6557_v52  ;;  %5678 = vmatprep.subr.bf16.mxu0 %v6562_v4  ;;  %v6602_v52 = vld [vmem:[%s8739_s3 + $0x830] ss:$12 sps:$4 sm:$0xff]  }
 0x217   : > { %5666 = vmatprep.subr.bf16.mxu1 %v6560_v5  ;;  %v6604_v5 = vld [vmem:[%s8739_s3 + $0x8d8] ss:$12 sps:$4 sm:$0xff]   ;;  %v6605_v4 = vld [vmem:[%s8739_s3 + $0x710] ss:$12 sps:$4 sm:$0xff]  }
 0x219   : > { %5679 = vmatpush3.bf16.msra.mxu0 %v6563_v57  ;;  %v6607_v57 = vld [vmem:[%s8739_s3 + $0x650] ss:$12 sps:$4 sm:$0xff]  }
 0x21a   : > { %5667 = vmatpush3.bf16.msra.mxu1 %v6561_v17  ;;  %5680 = vmatprep.subr.bf16.mxu0 %v6566_v48  ;;  %v6606_v17 = vld [vmem:[%s8739_s3 + $0x818] ss:$12 sps:$4 sm:$0xff]  }
 0x21b   : > { %5668 = vmatprep.subr.bf16.mxu1 %v6564_v8  ;;  %v6608_v8 = vld [vmem:[%s8739_s3 + $0x8c0] ss:$12 sps:$4 sm:$0xff]   ;;  %v6611_v48 = vld [vmem:[%s8739_s3 + $0x638] ss:$12 sps:$4 sm:$0xff]  }
 0x21d   : > { %5681 = vmatpush3.bf16.msra.mxu0 %v6567_v6  ;;  %v6613_v6 = vld [vmem:[%s8739_s3 + $0x6e0] ss:$12 sps:$4 sm:$0xff]  }
 0x21e   : > { %5669 = vmatpush3.bf16.msra.mxu1 %v6565_v10  ;;  %5682 = vmatprep.subr.bf16.mxu0 %v6569_v13  ;;  %v6612_v10 = vld [vmem:[%s8739_s3 + $0x8a8] ss:$12 sps:$4 sm:$0xff]   ;;  %v6615_v13 = vld [vmem:[%s8739_s3 + $0x620] ss:$12 sps:$4 sm:$0xff]  }
 0x21f   : > { %5698 = vmatprep.subr.bf16.mxu1 %v6568_v11  ;;  %v6614_v11 = vld [vmem:[%s8739_s3 + $0x7e8] ss:$12 sps:$4 sm:$0xff]  }
 0x221   : > { %4801 = vmatmul.mubr.bf16.vlgmr.msra.gmra.mxu1 %v7937_v39  ;;  %5683 = vmatpush3.bf16.msra.mxu0 %v6571_v19  ;;  %v6577_v39 = vld [vmem:[%s8739_s3 + $0x3f8] ss:$12 sps:$4 sm:$0xff]   ;;  %v6617_v19 = vld [vmem:[%s8739_s3 + $0x6c8] ss:$12 sps:$4 sm:$0xff]  }
 0x222   : > { %5699 = vmatpush3.bf16.msra.mxu1 %v6570_v14  ;;  %4880 = vmatprep.mubr.bf16.mxu1 %v8084_v0  ;;  %v6578_v0 = vld [vmem:[%s8739_s3 + $0x500] ss:$12 sps:$4 sm:$0xff]   ;;  %v6616_v14 = vld [vmem:[%s8739_s3 + $0x890] ss:$12 sps:$4 sm:$0xff]  }
 0x223   : > { %5700 = vmatprep.subr.bf16.mxu1 %v6572_v20  ;;  %5684 = vmatprep.subr.bf16.mxu0 %v6573_v21  ;;  %v6618_v20 = vld [vmem:[%s8739_s3 + $0x7d0] ss:$12 sps:$4 sm:$0xff]   ;;  %v6619_v21 = vld [vmem:[%s8739_s3 + $0x608] ss:$12 sps:$4 sm:$0xff]  }
 0x225   : > { %5685 = vmatpush3.bf16.msra.mxu0 %v6575_v54  ;;  %v6621_v54 = vld [vmem:[%s8739_s3 + $0x7b8] ss:$12 sps:$4 sm:$0xff]  }
 0x226   : > { %5701 = vmatpush3.bf16.msra.mxu1 %v6574_v25  ;;  %5686 = vmatprep.subr.bf16.mxu0 %v6577_v39  ;;  %v6620_v25 = vld [vmem:[%s8739_s3 + $0x878] ss:$12 sps:$4 sm:$0xff]   ;;  %v6623_v39 = vld [vmem:[%s8739_s3 + $0x7a0] ss:$12 sps:$4 sm:$0xff]  }
 0x227   : > { %5702 = vmatprep.subr.bf16.mxu1 %v6576_v7  ;;  %v6622_v7 = vld [vmem:[%s8739_s3 + $0x860] ss:$12 sps:$4 sm:$0xff]  }
 0x229   : > { %5687 = vmatpush3.bf16.msra.mxu0 %v6579_v35  ;;  %v6625_v35 = vld [vmem:[%s8739_s3 + $0x788] ss:$12 sps:$4 sm:$0xff]  }
 0x22a   : > { %5703 = vmatpush3.bf16.msra.mxu1 %v6578_v0  ;;  %5688 = vmatprep.subr.bf16.mxu0 %v6581_v18  ;;  %v6624_v0 = vld [vmem:[%s8739_s3 + $0x848] ss:$12 sps:$4 sm:$0xff]  }
 0x22b   : > { %5704 = vmatprep.subr.bf16.mxu1 %v6580_v26 }
 0x22d   : > { %5689 = vmatpush3.bf16.msra.mxu0 %v6583_v24 }
 0x22e   : > { %5705 = vmatpush3.bf16.msra.mxu1 %v6582_v9  ;;  %5690 = vmatprep.subr.bf16.mxu0 %v6585_v28 }
 0x22f   : > { %5706 = vmatprep.subr.bf16.mxu1 %v6584_v27 }
 0x231   : > { %5691 = vmatpush3.bf16.msra.mxu0 %v6587_v12 }
 0x232   : > { %5707 = vmatpush3.bf16.msra.mxu1 %v6586_v1  ;;  %5720 = vmatprep.subr.bf16.mxu0 %v6590_v31 }
 0x233   : > { %5708 = vmatprep.subr.bf16.mxu1 %v6588_v29 }
 0x234   : > { %v4516_v43 = vpop.f32.mrf.mxu0  ;;  %4841 = vmatmul.mubr.bf16.vlgmr.msra.gmra.mxu0 %v8148_v16 }
 0x235   : > { %v4517_v45 = vadd.f32 %v4516_v43, %v2934_v32  ;;  %v4557_v2 = vpop.f32.mrf.mxu1  ;;  %5721 = vmatpush3.bf16.msra.mxu0 %v6591_v37  ;;  %4920 = vmatprep.mubr.bf16.mxu0 %v8295_v44 }
 0x236   : > { %5709 = vmatpush3.bf16.msra.mxu1 %v6589_v33  ;;  %v4518_v49 = vpop.f32.mrf.mxu0  ;;  %5722 = vmatprep.subr.bf16.mxu0 %v6594_v23 }
 0x237   : > { %v8587_v36 = vadd.f32 %v4557_v2, %v4517_v45  ;;  %v4519_v16 = vadd.f32 %v4518_v49, %v2938_v38  ;;  %v4559_v53 = vpop.f32.mrf.mxu1  ;;  %5710 = vmatprep.subr.bf16.mxu1 %v6592_v42 }
 0x238   : > { %v4520_v44 = vpop.f32.mrf.mxu0 }
 0x239   : > { %v8592_v22 = vadd.f32 %v4559_v53, %v4519_v16  ;;  %v4561_v56 = vpop.f32.mrf.mxu1  ;;  %5723 = vmatpush3.bf16.msra.mxu0 %v6595_v50 }
 0x23a   : > { %5711 = vmatpush3.bf16.msra.mxu1 %v6593_v47  ;;  %v4521_v59 = vpop.f32.mrf.mxu0  ;;  %5724 = vmatprep.subr.bf16.mxu0 %v6598_v55 }
 0x23b   : > { %5712 = vmatprep.subr.bf16.mxu1 %v6596_v51  ;;  %v4562_v62 = vpop.f32.mrf.mxu1 }
 0x23d   : > { %5725 = vmatpush3.bf16.msra.mxu0 %v6599_v60 }
 0x23e   : > { %5713 = vmatpush3.bf16.msra.mxu1 %v6597_v58  ;;  %5726 = vmatprep.subr.bf16.mxu0 %v6601_v63 }
 0x23f   : > { %5742 = vmatprep.subr.bf16.mxu1 %v6600_v61 }
 0x241   : > { %4881 = vmatmul.mubr.bf16.vlgmr.msra.gmra.mxu1 %v8156_v40  ;;  %5727 = vmatpush3.bf16.msra.mxu0 %v6603_v3  ;;  %v6609_v40 = vld [vmem:[%s8739_s3 + $0x6f8] ss:$12 sps:$4 sm:$0xff]  }
 0x242   : > { %5743 = vmatpush3.bf16.msra.mxu1 %v6602_v52  ;;  %4960 = vmatprep.mubr.bf16.mxu1 %v8388_v34  ;;  %v6610_v34 = vld [vmem:[%s8739_s3 + $0x800] ss:$12 sps:$4 sm:$0xff]  }
 0x243   : > { %5744 = vmatprep.subr.bf16.mxu1 %v6604_v5  ;;  %5728 = vmatprep.subr.bf16.mxu0 %v6605_v4 }
 0x245   : > { %5729 = vmatpush3.bf16.msra.mxu0 %v6607_v57 }
 0x246   : > { %5745 = vmatpush3.bf16.msra.mxu1 %v6606_v17  ;;  %5730 = vmatprep.subr.bf16.mxu0 %v6609_v40  ;;  %v2942_v17 = vrot.slane %v8555_v30, %v7782_v46 }
 0x247   : > { %5746 = vmatprep.subr.bf16.mxu1 %v6608_v8 }
 0x249   : > { %5731 = vmatpush3.bf16.msra.mxu0 %v6611_v48 }
 0x24a   : > { %5747 = vmatpush3.bf16.msra.mxu1 %v6610_v34  ;;  %5732 = vmatprep.subr.bf16.mxu0 %v6613_v6 }
 0x24b   : > { %5748 = vmatprep.subr.bf16.mxu1 %v6612_v10 }
 0x24d   : > { %5733 = vmatpush3.bf16.msra.mxu0 %v6615_v13 }
 0x24e   : > { %5749 = vmatpush3.bf16.msra.mxu1 %v6614_v11  ;;  %5734 = vmatprep.subr.bf16.mxu0 %v6617_v19 }
 0x24f   : > { %5750 = vmatprep.subr.bf16.mxu1 %v6616_v14 }
 0x251   : > { %5735 = vmatpush3.bf16.msra.mxu0 %v6619_v21 }
 0x252   : > { %5751 = vmatpush3.bf16.msra.mxu1 %v6618_v20 }
 0x253   : > { %5752 = vmatprep.subr.bf16.mxu1 %v6620_v25 }
 0x254   : > { %4921 = vmatmul.mubr.bf16.vlgmr.msra.gmra.mxu0 %v8366_v15 }
 0x256   : > { %5753 = vmatpush3.bf16.msra.mxu1 %v6621_v54 }
 0x257   : > { %5754 = vmatprep.subr.bf16.mxu1 %v6622_v7 }
 0x25a   : > { %5755 = vmatpush3.bf16.msra.mxu1 %v6623_v39 }
 0x25b   : > { %5756 = vmatprep.subr.bf16.mxu1 %v6624_v0 }
 0x25e   : > { %5757 = vmatpush3.bf16.msra.mxu1 %v6625_v35 }
 0x261   : > { %4961 = vmatmul.mubr.bf16.vlgmr.msra.gmra.mxu1 %v8396_v41 }
 0x274   : > { %v4598_v15 = vpop.f32.mrf.mxu0 }
 0x275   : > { %v4599_v26 = vadd.f32 %v4598_v15, %v8587_v36  ;;  %v4639_v18 = vpop.f32.mrf.mxu1 }
 0x276   : > { %v4600_v9 = vpop.f32.mrf.mxu0 }
 0x277   : > { %v4640_v24 = vadd.f32 %v4639_v18, %v4599_v26  ;;  %v4601_v27 = vadd.f32 %v4600_v9, %v8592_v22  ;;  %v4641_v28 = vpop.f32.mrf.mxu1 }
 0x278   : > { %v4602_v1 = vpop.f32.mrf.mxu0 }
 0x279   : > { %v4642_v12 = vadd.f32 %v4641_v28, %v4601_v27  ;;  %v4643_v29 = vpop.f32.mrf.mxu1 }
 0x27a   : > { %v4603_v31 = vpop.f32.mrf.mxu0 }
 0x27b   : > { %v4644_v32 = vpop.f32.mrf.mxu1 }
 0x2b4   : > { %v4680_v33 = vpop.f32.mrf.mxu0 }
 0x2b5   : > { %v4681_v42 = vadd.f32 %v4680_v33, %v4640_v24 }
 0x2b6   : > { %v4682_v37 = vpop.f32.mrf.mxu0 }
 0x2b7   : > { %v4683_v43 = vadd.f32 %v4682_v37, %v4642_v12 }
 0x2b8   : > { %v4684_v38 = vpop.f32.mrf.mxu0 }
 0x2ba   : > { %v4685_v41 = vpop.f32.mrf.mxu0 }
 0x2c1   : > { %v4721_v23 = vpop.f32.mrf.mxu1 }
 0x2c2   : > { %v4722_v45 = vadd.f32 %v4721_v23, %v4681_v42 }
 0x2c3   : > { %v4723_v2 = vpop.f32.mrf.mxu1 }
 0x2c4   : > { %4968 = vst [vmem:[%s8687_s11] sm:$0xff] %v4722_v45  ;;  %v4724_v47 = vadd.f32 %v4723_v2, %v4683_v43 }
 0x2c5   : > { %v4725_v49 = vpop.f32.mrf.mxu1 }
 0x2c6   : > { %4969 = vst [vmem:[%s8687_s11 + $0x8] sm:$0xff] %v4724_v47 }
 0x2c7   : > { %v4726_v50 = vpop.f32.mrf.mxu1 }
 0x2d4   : > { %v5648_v51 = vpop.f32.mrf.mxu0 }
 0x2d6   : > { %v5649_v36 = vpop.f32.mrf.mxu0 }
 0x2d7   : > { %v5650_v16 = vadd.f32 %v5649_v36, %v5648_v51 }
 0x2d8   : > { %v5651_v53 = vpop.f32.mrf.mxu0 }
 0x2d9   : > { %v4763_v34 = vadd.f32 %v5650_v16, %v2942_v17 }
 0x2da   : > { %v5652_v55 = vpop.f32.mrf.mxu0 }
 0x2e1   : > { %v5670_v44 = vpop.f32.mrf.mxu1 }
 0x2e3   : > { %v5671_v22 = vpop.f32.mrf.mxu1 }
 0x2e4   : > { %v5672_v8 = vadd.f32 %v5671_v22, %v5670_v44 }
 0x2e5   : > { %v5673_v56 = vpop.f32.mrf.mxu1 }
 0x2e6   : > { %v4803_v6 = vadd.f32 %v5672_v8, %v4763_v34 }
 0x2e7   : > { %v5674_v58 = vpop.f32.mrf.mxu1 }
 0x2f4   : > { %v5692_v59 = vpop.f32.mrf.mxu0 }
 0x2f6   : > { %v5693_v60 = vpop.f32.mrf.mxu0 }
 0x2f7   : > { %v5694_v48 = vadd.f32 %v5693_v60, %v5692_v59 }
 0x2f8   : > { %v5695_v61 = vpop.f32.mrf.mxu0 }
 0x2f9   : > { %v4843_v13 = vadd.f32 %v5694_v48, %v4803_v6 }
 0x2fa   : > { %v5696_v62 = vpop.f32.mrf.mxu0 }
 0x301   : > { %v5714_v63 = vpop.f32.mrf.mxu1 }
 0x303   : > { %v5715_v52 = vpop.f32.mrf.mxu1 }
 0x304   : > { %v5716_v11 = vadd.f32 %v5715_v52, %v5714_v63 }
 0x305   : > { %v5717_v3 = vpop.f32.mrf.mxu1 }
 0x306   : > { %v4883_v20 = vadd.f32 %v5716_v11, %v4843_v13 }
 0x307   : > { %v5718_v5 = vpop.f32.mrf.mxu1 }
 0x314   : > { %v5736_v4 = vpop.f32.mrf.mxu0 }
 0x316   : > { %v5737_v57 = vpop.f32.mrf.mxu0 }
 0x317   : > { %v5738_v14 = vadd.f32 %v5737_v57, %v5736_v4 }
 0x318   : > { %v5739_v40 = vpop.f32.mrf.mxu0 }
 0x319   : > { %v4923_v25 = vadd.f32 %v5738_v14, %v4883_v20 }
 0x31a   : > { %v5740_v10 = vpop.f32.mrf.mxu0 }
 0x321   : > { %v5758_v19 = vpop.f32.mrf.mxu1 }
 0x323   : > { %v5759_v21 = vpop.f32.mrf.mxu1 }
 0x324   : > { %v5760_v46 = vadd.f32 %v5759_v21, %v5758_v19 }
 0x325   : > { %v5761_v30 = vpop.f32.mrf.mxu1 }
 0x326   : > { %v4963_v54 = vadd.f32 %v5760_v46, %v4923_v25 }
 0x327   : > { %v5762_v7 = vpop.f32.mrf.mxu1 }
 0x328   : > { %4970 = vst [vmem:[%s8687_s11 + $0x10] sm:$0xff] %v4963_v54 }
 0x329   : > { %6641 = shalt.err (!%p6638_p3)
}
 0x32a   : > { %s6642_s30 = scalar_lea.hbm %s8698_s16, 384  ;;  %s6646_s7 = scalar_lea.hbm %s8741_s5, 768 }
 0x32b   : > { %p6643_p4 = scmp.ne.s32.totalorder %s8698_s16, %s6642_s30  ;;  %p6647_p9 = scmp.lt.s32.totalorder %s8698_s16, %s8741_s5 }
 0x32c   : > { %p6648_p10 = scmp.lt.s32.totalorder %s6646_s7, %s6642_s30 }
 0x32d   : > { %p6644_p7 = pnand %p6643_p4, %p6760_p5 }
 0x32e   : > { %p6649_p11 = por %p6648_p10, %p6647_p9 }
 0x32f   : > { %p6645_p8 = pneg %p6644_p7 }
 0x331   : > { %p6650_p12 = pnand %p6649_p11, %p6645_p8 }
 0x333   : > { %6653 = shalt.err (!%p6650_p12)
}
 0x334   : > { %5767 = dma.vmem_to_hbm [thread:$0]  (%p6760_p5), %s4987_s12, 384, %s8698_s16, %s4972_s17  }
 0x335 PF: > { %p5773_p13 = scmp.ge.s32.totalorder %s6688_s21, 2  ;;  %s4998_s11 = sand.u32 1, %s6676_s18  }
 0x336   : > { %s4999_s9 = scalar_lea.sflag [#allocation3], %s4998_s11 }
 0x337   : > { %p5770_p0 = pnand %p5773_p13, %p6764_p6 }
 0x339   : > { %p5771_p1 = pneg %p5770_p0 }
 0x33b   : > { %6671 = dma.done.wait (%p5771_p1), %s4999_s9, 384  }
 0x33c   : > { %6673 = vsyncadd (%p5771_p1), %s4999_s9, 4294966912  ;;  %p15_p2 = scmp.ge.s32.totalorder %s6747_s24, 4   ;;  %s8744_s18 = smov %s6680_s19 }
 0x33d   : > { %s8745_s19 = smov %s6684_s20  ;;  %s8746_s20 = smov %s6758_s27 }
 0x33e   : > { %s8747_s21 = smov %s6747_s24  ;;  %17 = sbr.rel (!%p15_p2) target bundleno = 3 (0x3), region = 75 }
 0x343   :  { %5004 = vsyncpa [#allocation3], 1 }
 0x344   :  { %5006 = vsyncpa [#allocation3 + $0x1], 1 }

</bundles_post_ra>
